<compile_context>
chip_gen: v5e
topology: v5e:2x2
jax: 0.10.0
libtpu: 0.0.40
codegen_flags: <defaults>
</compile_context>

<pallas_src>
import jax
import jax.numpy as jnp
from jax.experimental import pallas as pl
from jax.experimental.pallas import tpu as pltpu

_SQRT_2PI = (2.0 * 3.14159) ** 0.5   # matches the torch.jit.script constant pi=3.14159
_MAX_TP = 4096                       # rows per tile (2 MiB f32 output block at K=128)


# ----------------------------------------------------------------------------
# Pallas kernel
# ----------------------------------------------------------------------------
def _gaussian_kernel(x_ref, mul_ref, bias_ref, mean_ref, std_ref, o_ref):
    """One pair-tile.

    x_ref/mul_ref/bias_ref : (TP, 1)   edge scalars, pairs on sublanes
    mean_ref/std_ref       : (1, K)    K on lanes (K == 128)
    o_ref                  : (TP, K)
    """
    y = mul_ref[...] * x_ref[...] + bias_ref[...]        # (TP, 1)

    std = jnp.abs(std_ref[...]) + 1e-5                   # (1, K)  tiny, per-step
    inv_std = 1.0 / std                                  # exact; only K elements
    coef = 1.0 / (_SQRT_2PI * std)                       # 1 / (sqrt(2*pi)*std)

    z = (y - mean_ref[...]) * inv_std                    # (TP, K) lane-dense
    o_ref[...] = (jnp.exp(-0.5 * z * z) * coef).astype(o_ref.dtype)


# ----------------------------------------------------------------------------
# Tiling choice: avoid output padding (-> avoids an extra HBM copy on slice)
# ----------------------------------------------------------------------------
def _pick_tile(m):
    if m <= _MAX_TP:
        return m, m                       # full extent, single block
    # largest multiple of 8 that divides m (no padding, no output copy)
    for tp in range(_MAX_TP, 511, -8):
        if m % tp == 0:
            return tp, m
    # fallback: pad rows to a multiple of 1024 (rare; costs one output slice)
    tp = 1024
    return tp, ((m + tp - 1) // tp) * tp


# ----------------------------------------------------------------------------
# Wrapper
# ----------------------------------------------------------------------------
@jax.jit
def gaussian_layer(x, edge_types, means_w, stds_w, mul_w, bias_w):
    """x: (G, N, N) float; edge_types: (G, N, N) int
       means_w/stds_w: (1, K); mul_w/bias_w: (num_edge_types, 1)
       returns (G, N, N, K) in means_w.dtype."""
    G, N, _ = x.shape
    K = means_w.shape[-1]
    M = G * N * N
    out_dtype = means_w.dtype

    # Embedding gathers (2 scalars per edge) in the wrapper; kernel handles the
    # K-wide expansion + exp.  # TODO(synk): in-kernel gather would need manual
    # DMA / one-hot matmul and is not worth it at 1/K of the output bytes.
    et = edge_types.reshape(M)
    xf = x.reshape(M, 1).astype(jnp.float32)
    mulf = mul_w[et].astype(jnp.float32)                 # (M, 1)
    biasf = bias_w[et].astype(jnp.float32)               # (M, 1)
    meanf = means_w.reshape(1, K).astype(jnp.float32)
    stdf = stds_w.reshape(1, K).astype(jnp.float32)

    TP, M_pad = _pick_tile(M)
    if M_pad != M:
        pad = ((0, M_pad - M), (0, 0))
        xf = jnp.pad(xf, pad)
        mulf = jnp.pad(mulf, pad)
        biasf = jnp.pad(biasf, pad)

    grid = (M_pad // TP,)
    row_spec = pl.BlockSpec((TP, 1), lambda p: (p, 0))
    vec_spec = pl.BlockSpec((1, K), lambda p: (0, 0))

    cost = pl.CostEstimate(
        flops=6 * M_pad * K,
        transcendentals=M_pad * K,
        bytes_accessed=4 * (M_pad * K + 3 * M_pad + 2 * K),
    )

    out = pl.pallas_call(
        _gaussian_kernel,
        out_shape=jax.ShapeDtypeStruct((M_pad, K), out_dtype),
        grid=grid,
        in_specs=[row_spec, row_spec, row_spec, vec_spec, vec_spec],
        out_specs=pl.BlockSpec((TP, K), lambda p: (p, 0)),
        compiler_params=pltpu.CompilerParams(
            dimension_semantics=("parallel",)),
        cost_estimate=cost,
    )(xf, mulf, biasf, meanf, stdf)

    if M_pad != M:
        out = out[:M]
    return out.reshape(G, N, N, K)


# ----------------------------------------------------------------------------
# Pure-JAX reference (mirrors the PyTorch forward op-for-op)
# ----------------------------------------------------------------------------
def reference(x, edge_types, means_w, stds_w, mul_w, bias_w):
    K = means_w.shape[-1]
    mul = mul_w[edge_types]                              # (G, N, N, 1)
    bias = bias_w[edge_types]                            # (G, N, N, 1)
    y = mul * x[..., None] + bias                        # (G, N, N, 1)
    y = jnp.broadcast_to(y, y.shape[:-1] + (K,)).astype(jnp.float32)
    mean = means_w.astype(jnp.float32).reshape(-1)
    std = jnp.abs(stds_w.astype(jnp.float32).reshape(-1)) + 1e-5
    a = (2.0 * 3.14159) ** 0.5
    out = jnp.exp(-0.5 * ((y - mean) / std) ** 2) / (a * std)
    return out.astype(means_w.dtype)


# ----------------------------------------------------------------------------
# Demo
# ----------------------------------------------------------------------------
if __name__ == "__main__":
    G, N, K, E = 2, 16, 128, 1024

    key = jax.random.PRNGKey(0)
    k1, k2, k3, k4, k5, k6 = jax.random.split(key, 6)

    # Module parameters (randomized mul/bias so the gather is exercised).
    means_w = jax.random.uniform(k1, (1, K), jnp.float32, 0.0, 3.0)
    stds_w = jax.random.uniform(k2, (1, K), jnp.float32, 0.0, 3.0)
    mul_w = 1.0 + 0.1 * jax.random.normal(k3, (E, 1), jnp.float32)
    bias_w = 0.1 * jax.random.normal(k4, (E, 1), jnp.float32)

    # Inputs: pairwise distances + integer edge types.
    x = jax.random.uniform(k5, (G, N, N), jnp.float32, 0.0, 5.0)
    edge_types = jax.random.randint(k6, (G, N, N), 0, E)

    out = gaussian_layer(x, edge_types, means_w, stds_w, mul_w, bias_w)
    out = jax.block_until_ready(out)

    ref = reference(x, edge_types, means_w, stds_w, mul_w, bias_w)
    assert out.shape == (G, N, N, K)
    max_diff = jnp.max(jnp.abs(out - ref))
    assert jnp.allclose(out, ref, atol=1e-4, rtol=1e-4), \
        f"max abs diff {max_diff}"

    print("KERNEL_OK")
</pallas_src>

<mosaic_0001>
module attributes {stable_mosaic.version = 11 : i64} {
  func.func @_gaussian_kernel(%arg0: i32, %arg1: memref<512x1xf32, #tpu.memory_space<vmem>>, %arg2: memref<512x1xf32, #tpu.memory_space<vmem>>, %arg3: memref<512x1xf32, #tpu.memory_space<vmem>>, %arg4: memref<1x128xf32, #tpu.memory_space<vmem>>, %arg5: memref<1x128xf32, #tpu.memory_space<vmem>>, %arg6: memref<512x128xf32, #tpu.memory_space<vmem>>) attributes {dimension_semantics = [#tpu.dimension_semantics<parallel>], iteration_bounds = array<i64: 1>, scalar_prefetch = 0 : i64, scratch_operands = 0 : i64, tpu.core_type = #tpu.core_type<tc>, window_params = [{transform_indices = @transform_0, window_bounds = array<i64: 512, 1>}, {transform_indices = @transform_1, window_bounds = array<i64: 512, 1>}, {transform_indices = @transform_2, window_bounds = array<i64: 512, 1>}, {pipeline_mode = #tpu.pipeline_mode<synchronous>, transform_indices = @transform_3, window_bounds = array<i64: 1, 128>}, {pipeline_mode = #tpu.pipeline_mode<synchronous>, transform_indices = @transform_4, window_bounds = array<i64: 1, 128>}, {transform_indices = @transform_5, window_bounds = array<i64: 512, 128>}]} {
    %c0 = arith.constant 0 : index
    %c0_0 = arith.constant 0 : index
    %0 = vector.load %arg2[%c0, %c0_0] : memref<512x1xf32, #tpu.memory_space<vmem>>, vector<512x1xf32>
    %c0_1 = arith.constant 0 : index
    %c0_2 = arith.constant 0 : index
    %1 = vector.load %arg1[%c0_1, %c0_2] : memref<512x1xf32, #tpu.memory_space<vmem>>, vector<512x1xf32>
    %2 = arith.mulf %0, %1 : vector<512x1xf32>
    %c0_3 = arith.constant 0 : index
    %c0_4 = arith.constant 0 : index
    %3 = vector.load %arg3[%c0_3, %c0_4] : memref<512x1xf32, #tpu.memory_space<vmem>>, vector<512x1xf32>
    %4 = arith.addf %2, %3 : vector<512x1xf32>
    %c0_5 = arith.constant 0 : index
    %c0_6 = arith.constant 0 : index
    %5 = vector.load %arg5[%c0_5, %c0_6] : memref<1x128xf32, #tpu.memory_space<vmem>>, vector<1x128xf32>
    %6 = math.absf %5 : vector<1x128xf32>
    %cst = arith.constant 9.99999974E-6 : f32
    %7 = vector.broadcast %cst : f32 to vector<1x128xf32>
    %8 = arith.addf %6, %7 : vector<1x128xf32>
    %cst_7 = arith.constant 1.000000e+00 : f32
    %9 = vector.broadcast %cst_7 : f32 to vector<1x128xf32>
    %10 = arith.divf %9, %8 : vector<1x128xf32>
    %cst_8 = arith.constant 2.50662732 : f32
    %11 = vector.broadcast %cst_8 : f32 to vector<1x128xf32>
    %12 = arith.mulf %11, %8 : vector<1x128xf32>
    %cst_9 = arith.constant 1.000000e+00 : f32
    %13 = vector.broadcast %cst_9 : f32 to vector<1x128xf32>
    %14 = arith.divf %13, %12 : vector<1x128xf32>
    %c0_10 = arith.constant 0 : index
    %c0_11 = arith.constant 0 : index
    %15 = vector.load %arg4[%c0_10, %c0_11] : memref<1x128xf32, #tpu.memory_space<vmem>>, vector<1x128xf32>
    %16 = vector.broadcast %4 : vector<512x1xf32> to vector<512x128xf32>
    %17 = vector.broadcast %15 : vector<1x128xf32> to vector<512x128xf32>
    %18 = arith.subf %16, %17 : vector<512x128xf32>
    %19 = vector.broadcast %10 : vector<1x128xf32> to vector<512x128xf32>
    %20 = arith.mulf %18, %19 : vector<512x128xf32>
    %cst_12 = arith.constant -5.000000e-01 : f32
    %21 = vector.broadcast %cst_12 : f32 to vector<512x128xf32>
    %22 = arith.mulf %21, %20 : vector<512x128xf32>
    %23 = arith.mulf %22, %20 : vector<512x128xf32>
    %24 = math.exp %23 : vector<512x128xf32>
    %25 = vector.broadcast %14 : vector<1x128xf32> to vector<512x128xf32>
    %26 = arith.mulf %24, %25 : vector<512x128xf32>
    %c0_13 = arith.constant 0 : index
    %c0_14 = arith.constant 0 : index
    %27 = vector.load %arg6[%c0_13, %c0_14] : memref<512x128xf32, #tpu.memory_space<vmem>>, vector<512x128xf32>
    tpu.vector_store %arg6[%c0_13, %c0_14], %26 {strides = array<i32>} : memref<512x128xf32, #tpu.memory_space<vmem>>, vector<512x128xf32>,
    return
  }
  func.func @transform_0(%arg0: i32) -> (i32, i32) {
    %c0_i32 = arith.constant 0 : i32
    %c0_i32_0 = arith.constant 0 : i32
    return %arg0, %c0_i32 : i32, i32
  }
  func.func @transform_1(%arg0: i32) -> (i32, i32) {
    %c0_i32 = arith.constant 0 : i32
    %c0_i32_0 = arith.constant 0 : i32
    return %arg0, %c0_i32 : i32, i32
  }
  func.func @transform_2(%arg0: i32) -> (i32, i32) {
    %c0_i32 = arith.constant 0 : i32
    %c0_i32_0 = arith.constant 0 : i32
    return %arg0, %c0_i32 : i32, i32
  }
  func.func @transform_3(%arg0: i32) -> (i32, i32) {
    %c0_i32 = arith.constant 0 : i32
    %c0_i32_0 = arith.constant 0 : i32
    %c0_i32_1 = arith.constant 0 : i32
    return %c0_i32, %c0_i32_0 : i32, i32
  }
  func.func @transform_4(%arg0: i32) -> (i32, i32) {
    %c0_i32 = arith.constant 0 : i32
    %c0_i32_0 = arith.constant 0 : i32
    %c0_i32_1 = arith.constant 0 : i32
    return %c0_i32, %c0_i32_0 : i32, i32
  }
  func.func @transform_5(%arg0: i32) -> (i32, i32) {
    %c0_i32 = arith.constant 0 : i32
    %c0_i32_0 = arith.constant 0 : i32
    return %arg0, %c0_i32 : i32, i32
  }
}

</mosaic_0001>

<bundles_post_ra>
// kernel: gaussian_layer.1
= control target key start
LH: loop header
LB: loop body
LE: loop exit
PB: predicated region body
PF: predicated region fallthrough
CT: control target
= control target key end

     0   :  { %v1402_v3 = vmov 0   ;;  %s2265_s0 = inlined_call_operand.vmem [shape: f32[512,1], index: 0, kind: input, shape index: {}]   ;;  %s2266_s1 = inlined_call_operand.vmem [shape: f32[512,1], index: 1, kind: input, shape index: {}]   ;;  %s2267_s2 = inlined_call_operand.vmem [shape: f32[512,1], index: 2, kind: input, shape index: {}]   ;;  %s2268_s3 = inlined_call_operand.vmem [shape: f32[1,128], index: 3, kind: input, shape index: {}]   ;;  %s2269_s4 = inlined_call_operand.vmem [shape: f32[1,128], index: 4, kind: input, shape index: {}]   ;;  %s2270_s5 = inlined_call_operand.hbm [shape: f32[512,128], index: 5, kind: output, shape index: {}]  }
   0x1   :  { %v25_v0 = vld [vmem:[%s2266_s1 + $0x20] sm:$0xff]  ;;  %1241 = vset.pattern.permute.xlu2 %v1402_v3  ;;  %1240 = vset.pattern.permute.xlu1 %v1402_v3  ;;  %v23_v5 = vld [vmem:[%s2266_s1 + $0x10] sm:$0xff]  ;;  %v26_v14 = vld [vmem:[%s2266_s1 + $0x28] sm:$0xff] }
   0x2   :  { %v89_v1 = vld [vmem:[%s2265_s0 + $0x20] sm:$0xff]  ;;  %v87_v6 = vld [vmem:[%s2265_s0 + $0x10] sm:$0xff]  ;;  %1239 = vset.pattern.permute.xlu0 %v1402_v3  ;;  %v90_v15 = vld [vmem:[%s2265_s0 + $0x28] sm:$0xff] }
   0x3   :  { %v217_v2 = vld [vmem:[%s2267_s2 + $0x20] sm:$0xff]  ;;  %v153_v4 = vmul.f32 %v89_v1, %v25_v0  ;;  %v215_v7 = vld [vmem:[%s2267_s2 + $0x10] sm:$0xff]  ;;  %v151_v8 = vmul.f32 %v87_v6, %v23_v5  ;;  %v24_v17 = vld [vmem:[%s2266_s1 + $0x18] sm:$0xff]  ;;  %v154_v20 = vmul.f32 %v90_v15, %v26_v14 }
   0x4   :  { %v21_v9 = vld [vmem:[%s2266_s1] sm:$0xff]  ;;  %v88_v18 = vld [vmem:[%s2265_s0 + $0x18] sm:$0xff]  ;;  %v22_v21 = vld [vmem:[%s2266_s1 + $0x8] sm:$0xff] }
   0x5   :  { %v85_v10 = vld [vmem:[%s2265_s0] sm:$0xff]  ;;  %v281_v12 = vadd.f32 %v217_v2, %v153_v4  ;;  %v279_v16 = vadd.f32 %v215_v7, %v151_v8  ;;  %v86_v22 = vld [vmem:[%s2265_s0 + $0x8] sm:$0xff]  ;;  %v152_v24 = vmul.f32 %v88_v18, %v24_v17  ;;  %v216_v25 = vld [vmem:[%s2267_s2 + $0x18] sm:$0xff] }
   0x6   :  { %v213_v11 = vld [vmem:[%s2267_s2] sm:$0xff]  ;;  %v149_v13 = vmul.f32 %v85_v10, %v21_v9  ;;  %v218_v23 = vld [vmem:[%s2267_s2 + $0x28] sm:$0xff]  ;;  %v150_v26 = vmul.f32 %v86_v22, %v22_v21  ;;  %v28_v33 = vld [vmem:[%s2266_s1 + $0x38] sm:$0xff] }
   0x7   :  { %398 = vperm.xlu2 %1241, %v281_v12   ;;  %388 = vperm.xlu1 %1240, %v279_v16   ;;  %v214_v27 = vld [vmem:[%s2267_s2 + $0x8] sm:$0xff]  ;;  %v282_v28 = vadd.f32 %v218_v23, %v154_v20  ;;  %v280_v29 = vadd.f32 %v216_v25, %v152_v24  ;;  %v29_v30 = vld [vmem:[%s2266_s1 + $0x40] sm:$0xff]  ;;  %v92_v34 = vld [vmem:[%s2265_s0 + $0x38] sm:$0xff] }
   0x8   :  { %v277_v19 = vadd.f32 %v213_v11, %v149_v13  ;;  %v93_v31 = vld [vmem:[%s2265_s0 + $0x40] sm:$0xff]  ;;  %v278_v32 = vadd.f32 %v214_v27, %v150_v26  ;;  %v27_v35 = vld [vmem:[%s2266_s1 + $0x30] sm:$0xff]  ;;  %v156_v39 = vmul.f32 %v92_v34, %v28_v33  ;;  %v220_v40 = vld [vmem:[%s2267_s2 + $0x38] sm:$0xff] }
   0x9   :  { %v91_v36 = vld [vmem:[%s2265_s0 + $0x30] sm:$0xff]  ;;  %v157_v37 = vmul.f32 %v93_v31, %v29_v30  ;;  %v221_v38 = vld [vmem:[%s2267_s2 + $0x40] sm:$0xff]  ;;  %v32_v45 = vld [vmem:[%s2266_s1 + $0x58] sm:$0xff] }
   0xa   :  { %378 = vperm.xlu0 %1239, %v277_v19   ;;  %v155_v41 = vmul.f32 %v91_v36, %v27_v35  ;;  %v219_v42 = vld [vmem:[%s2267_s2 + $0x30] sm:$0xff]  ;;  %v284_v44 = vadd.f32 %v220_v40, %v156_v39  ;;  %v96_v46 = vld [vmem:[%s2265_s0 + $0x58] sm:$0xff]  ;;  %v30_v50 = vld [vmem:[%s2266_s1 + $0x48] sm:$0xff] }
   0xb   :  { %v285_v43 = vadd.f32 %v221_v38, %v157_v37  ;;  %v31_v48 = vld [vmem:[%s2266_s1 + $0x50] sm:$0xff]  ;;  %v94_v51 = vld [vmem:[%s2265_s0 + $0x48] sm:$0xff]  ;;  %v160_v52 = vmul.f32 %v96_v46, %v32_v45 }
   0xc   :  { %v283_v47 = vadd.f32 %v219_v42, %v155_v41  ;;  %v95_v49 = vld [vmem:[%s2265_s0 + $0x50] sm:$0xff] }
   0xf   :  { %403 = vperm.xlu2 %1241, %v282_v28   ;;  %393 = vperm.xlu1 %1240, %v280_v29  }
  0x12   :  { %383 = vperm.xlu0 %1239, %v278_v32  }
  0x17   :  { %418 = vperm.xlu2 %1241, %v285_v43  }
  0x18   :  { %10 = vsyncpa [#allocation3], 0  ;;  %413 = vperm.xlu1 %1240, %v284_v44   ;;  %v224_v53 = vld [vmem:[%s2267_s2 + $0x58] sm:$0xff]  ;;  %v159_v54 = vmul.f32 %v95_v49, %v31_v48  ;;  %v223_v55 = vld [vmem:[%s2267_s2 + $0x50] sm:$0xff]  ;;  %v158_v56 = vmul.f32 %v94_v51, %v30_v50  ;;  %s1223_s24 = sshll.u32 %s2270_s5, 4  ;;  %s1404_s25 = smov 128   ;;  %s1224_s24 = int_to_ptr.hbm [resolvable:$true] %s1223_s24 }
  0x19   :  { %v222_v57 = vld [vmem:[%s2267_s2 + $0x48] sm:$0xff]  ;;  %v288_v58 = vadd.f32 %v224_v53, %v160_v52  ;;  %v35_v60 = vld [vmem:[%s2266_s1 + $0x70] sm:$0xff]  ;;  %v33_v1 = vld [vmem:[%s2266_s1 + $0x60] sm:$0xff]  ;;  %s1405_s26 = smov 8  }
  0x1a   :  { %408 = vperm.xlu0 %1239, %v283_v47   ;;  %v287_v59 = vadd.f32 %v223_v55, %v159_v54  ;;  %v99_v61 = vld [vmem:[%s2265_s0 + $0x70] sm:$0xff]  ;;  %v286_v62 = vadd.f32 %v222_v57, %v158_v56  ;;  %v34_v63 = vld [vmem:[%s2266_s1 + $0x68] sm:$0xff]  ;;  %v97_v2 = vld [vmem:[%s2265_s0 + $0x60] sm:$0xff] }
  0x1b   :  { %v98_v0 = vld [vmem:[%s2265_s0 + $0x68] sm:$0xff]  ;;  %v163_v3 = vmul.f32 %v99_v61, %v35_v60  ;;  %v227_v4 = vld [vmem:[%s2267_s2 + $0x70] sm:$0xff]  ;;  %v161_v7 = vmul.f32 %v97_v2, %v33_v1  ;;  %v225_v8 = vld [vmem:[%s2267_s2 + $0x60] sm:$0xff] }
  0x1c   :  { %v162_v5 = vmul.f32 %v98_v0, %v34_v63  ;;  %v226_v6 = vld [vmem:[%s2267_s2 + $0x68] sm:$0xff]  ;;  %v37_v14 = vld [vmem:[%s2266_s1 + $0x80] sm:$0xff]  ;;  %v36_v16 = vld [vmem:[%s2266_s1 + $0x78] sm:$0xff] }
  0x1d   :  { %v291_v9 = vadd.f32 %v227_v4, %v163_v3  ;;  %v38_v11 = vld [vmem:[%s2266_s1 + $0x88] sm:$0xff]  ;;  %v289_v13 = vadd.f32 %v225_v8, %v161_v7  ;;  %v101_v15 = vld [vmem:[%s2265_s0 + $0x80] sm:$0xff]  ;;  %v100_v17 = vld [vmem:[%s2265_s0 + $0x78] sm:$0xff] }
  0x1e   :  { %v290_v10 = vadd.f32 %v226_v6, %v162_v5  ;;  %v102_v12 = vld [vmem:[%s2265_s0 + $0x88] sm:$0xff]  ;;  %v165_v20 = vmul.f32 %v101_v15, %v37_v14  ;;  %v229_v21 = vld [vmem:[%s2267_s2 + $0x80] sm:$0xff]  ;;  %v164_v22 = vmul.f32 %v100_v17, %v36_v16  ;;  %v228_v23 = vld [vmem:[%s2267_s2 + $0x78] sm:$0xff] }
  0x1f   :  { %433 = vperm.xlu2 %1241, %v288_v58   ;;  %v166_v18 = vmul.f32 %v102_v12, %v38_v11  ;;  %v230_v19 = vld [vmem:[%s2267_s2 + $0x88] sm:$0xff]  ;;  %v41_v26 = vld [vmem:[%s2266_s1 + $0xa0] sm:$0xff]  ;;  %v40_v29 = vld [vmem:[%s2266_s1 + $0x98] sm:$0xff] }
  0x20   :  { %428 = vperm.xlu1 %1240, %v287_v59   ;;  %v293_v25 = vadd.f32 %v229_v21, %v165_v20  ;;  %v105_v27 = vld [vmem:[%s2265_s0 + $0xa0] sm:$0xff]  ;;  %v292_v28 = vadd.f32 %v228_v23, %v164_v22  ;;  %v104_v30 = vld [vmem:[%s2265_s0 + $0x98] sm:$0xff]  ;;  %v39_v31 = vld [vmem:[%s2266_s1 + $0x90] sm:$0xff] }
  0x21   :  { %v294_v24 = vadd.f32 %v230_v19, %v166_v18  ;;  %v103_v32 = vld [vmem:[%s2265_s0 + $0x90] sm:$0xff]  ;;  %v169_v33 = vmul.f32 %v105_v27, %v41_v26  ;;  %v233_v34 = vld [vmem:[%s2267_s2 + $0xa0] sm:$0xff]  ;;  %v168_v35 = vmul.f32 %v104_v30, %v40_v29  ;;  %v232_v36 = vld [vmem:[%s2267_s2 + $0x98] sm:$0xff] }
  0x22   :  { %423 = vperm.xlu0 %1239, %v286_v62   ;;  %v167_v37 = vmul.f32 %v103_v32, %v39_v31  ;;  %v231_v38 = vld [vmem:[%s2267_s2 + $0x90] sm:$0xff]  ;;  %v44_v41 = vld [vmem:[%s2266_s1 + $0xb8] sm:$0xff]  ;;  %v42_v46 = vld [vmem:[%s2266_s1 + $0xa8] sm:$0xff] }
  0x23   :  { %v297_v39 = vadd.f32 %v233_v34, %v169_v33  ;;  %v296_v40 = vadd.f32 %v232_v36, %v168_v35  ;;  %v108_v42 = vld [vmem:[%s2265_s0 + $0xb8] sm:$0xff]  ;;  %v43_v44 = vld [vmem:[%s2266_s1 + $0xb0] sm:$0xff]  ;;  %v106_v47 = vld [vmem:[%s2265_s0 + $0xa8] sm:$0xff] }
  0x24   :  { %v295_v43 = vadd.f32 %v231_v38, %v167_v37  ;;  %v107_v45 = vld [vmem:[%s2265_s0 + $0xb0] sm:$0xff]  ;;  %v172_v48 = vmul.f32 %v108_v42, %v44_v41  ;;  %v236_v49 = vld [vmem:[%s2267_s2 + $0xb8] sm:$0xff]  ;;  %v170_v52 = vmul.f32 %v106_v47, %v42_v46  ;;  %v234_v53 = vld [vmem:[%s2267_s2 + $0xa8] sm:$0xff] }
  0x25   :  { %v171_v50 = vmul.f32 %v107_v45, %v43_v44  ;;  %v235_v51 = vld [vmem:[%s2267_s2 + $0xb0] sm:$0xff]  ;;  %v46_v59 = vld [vmem:[%s2266_s1 + $0xc8] sm:$0xff]  ;;  %v45_v61 = vld [vmem:[%s2266_s1 + $0xc0] sm:$0xff] }
  0x26   :  { %v300_v54 = vadd.f32 %v236_v49, %v172_v48  ;;  %v47_v56 = vld [vmem:[%s2266_s1 + $0xd0] sm:$0xff]  ;;  %v298_v58 = vadd.f32 %v234_v53, %v170_v52  ;;  %v110_v60 = vld [vmem:[%s2265_s0 + $0xc8] sm:$0xff]  ;;  %v109_v62 = vld [vmem:[%s2265_s0 + $0xc0] sm:$0xff] }
  0x27   :  { %448 = vperm.xlu2 %1241, %v291_v9   ;;  %v299_v55 = vadd.f32 %v235_v51, %v171_v50  ;;  %v111_v57 = vld [vmem:[%s2265_s0 + $0xd0] sm:$0xff]  ;;  %v174_v1 = vmul.f32 %v110_v60, %v46_v59  ;;  %v238_v2 = vld [vmem:[%s2267_s2 + $0xc8] sm:$0xff]  ;;  %v173_v3 = vmul.f32 %v109_v62, %v45_v61  ;;  %v341_v4 = vld [vmem:[%s2269_s4] sm:$0x1] }
  0x28   :  { %443 = vperm.xlu1 %1240, %v290_v10   ;;  %v175_v63 = vmul.f32 %v111_v57, %v47_v56  ;;  %v239_v0 = vld [vmem:[%s2267_s2 + $0xd0] sm:$0xff]  ;;  %v237_v5 = vld [vmem:[%s2267_s2 + $0xc0] sm:$0xff]  ;;  %v342_v6 = vand.u32 2147483647, %v341_v4  ;;  %v50_v9 = vld [vmem:[%s2266_s1 + $0xe8] sm:$0xff] }
  0x29   :  { %v302_v8 = vadd.f32 %v238_v2, %v174_v1  ;;  %v114_v10 = vld [vmem:[%s2265_s0 + $0xe8] sm:$0xff]  ;;  %v301_v12 = vadd.f32 %v237_v5, %v173_v3  ;;  %v113_v14 = vld [vmem:[%s2265_s0 + $0xe0] sm:$0xff]  ;;  %v48_v15 = vld [vmem:[%s2266_s1 + $0xd8] sm:$0xff] }
  0x2a   :  { %438 = vperm.xlu0 %1239, %v289_v13   ;;  %v303_v7 = vadd.f32 %v239_v0, %v175_v63  ;;  %v1688_v11 = vadd.f32 1e-05, %v342_v6  ;;  %v49_v13 = vld [vmem:[%s2266_s1 + $0xe0] sm:$0xff]  ;;  %v112_v16 = vld [vmem:[%s2265_s0 + $0xd8] sm:$0xff]  ;;  %v178_v17 = vmul.f32 %v114_v10, %v50_v9  ;;  %v242_v18 = vld [vmem:[%s2267_s2 + $0xe8] sm:$0xff] }
  0x2b   :  { %v177_v19 = vmul.f32 %v113_v14, %v49_v13  ;;  %v241_v20 = vld [vmem:[%s2267_s2 + $0xe0] sm:$0xff]  ;;  %v176_v21 = vmul.f32 %v112_v16, %v48_v15  ;;  %v240_v22 = vld [vmem:[%s2267_s2 + $0xd8] sm:$0xff]  ;;  %v51_v32 = vld [vmem:[%s2266_s1 + $0xf0] sm:$0xff] }
  0x2c   :  { %1243 = vrcp.f32 %v1688_v11  ;;  %v306_v23 = vadd.f32 %v242_v18, %v178_v17  ;;  %v53_v26 = vld [vmem:[%s2266_s1 + $0x100] sm:$0xff]  ;;  %v52_v29 = vld [vmem:[%s2266_s1 + $0xf8] sm:$0xff]  ;;  %v115_v33 = vld [vmem:[%s2265_s0 + $0xf0] sm:$0xff]  ;;  %v1735_v34 = vmul.f32 2.5066273, %v1688_v11  ;;  %vm349_vm0 = vweird.f32 %v1688_v11 }
  0x2d   :  { %v117_v27 = vld [vmem:[%s2265_s0 + $0x100] sm:$0xff]  ;;  %v116_v30 = vld [vmem:[%s2265_s0 + $0xf8] sm:$0xff]  ;;  %v243_v41 = vld [vmem:[%s2267_s2 + $0xf0] sm:$0xff]  ;;  %v355_v53 = vand.u32 2147483648, %v1688_v11 }
  0x2e   :  { %v181_v35 = vmul.f32 %v117_v27, %v53_v26  ;;  %v245_v36 = vld [vmem:[%s2267_s2 + $0x100] sm:$0xff]  ;;  %v180_v37 = vmul.f32 %v116_v30, %v52_v29  ;;  %1245 = vrcp.f32 %v1735_v34  ;;  %v56_v44 = vld [vmem:[%s2266_s1 + $0x118] sm:$0xff]  ;;  %v55_v48 = vld [vmem:[%s2266_s1 + $0x110] sm:$0xff]  ;;  %vm365_vm4 = vweird.f32 %v1735_v34 }
  0x2f   :  { %463 = vperm.xlu2 %1241, %v294_v24   ;;  %v120_v45 = vld [vmem:[%s2265_s0 + $0x118] sm:$0xff]  ;;  %v119_v49 = vld [vmem:[%s2265_s0 + $0x110] sm:$0xff]  ;;  %v54_v50 = vld [vmem:[%s2266_s1 + $0x108] sm:$0xff]  ;;  %v356_v0 = vor.u32 1.1754944e-38, %v355_v53 }
  0x30   :  { %458 = vperm.xlu1 %1240, %v293_v25   ;;  %v305_v25 = vadd.f32 %v241_v20, %v177_v19  ;;  %v309_v42 = vadd.f32 %v245_v36, %v181_v35  ;;  %v118_v51 = vld [vmem:[%s2265_s0 + $0x108] sm:$0xff]  ;;  %v184_v52 = vmul.f32 %v120_v45, %v56_v44  ;;  %v183_v56 = vmul.f32 %v119_v49, %v55_v48  ;;  %v247_v59 = vld [vmem:[%s2267_s2 + $0x110] sm:$0xff]  ;;  %v57_v9 = vld [vmem:[%s2266_s1 + $0x120] sm:$0xff] }
  0x31   :  { %v182_v60 = vmul.f32 %v118_v51, %v54_v50  ;;  %v246_v62 = vld [vmem:[%s2267_s2 + $0x108] sm:$0xff]  ;;  %v59_v4 = vld [vmem:[%s2266_s1 + $0x130] sm:$0xff]  ;;  %v121_v10 = vld [vmem:[%s2265_s0 + $0x120] sm:$0xff] }
  0x32   :  { %453 = vperm.xlu0 %1239, %v292_v28   ;;  %v1712_v24 = vpop.eup %1243  ;;  %v304_v28 = vadd.f32 %v240_v22, %v176_v21  ;;  %v311_v2 = vadd.f32 %v247_v59, %v183_v56  ;;  %v123_v5 = vld [vmem:[%s2265_s0 + $0x130] sm:$0xff]  ;;  %v1812_v14 = vld [vmem:[%s2268_s3] ss:$0 sm:$0xff]  ;;  %v250_v18 = vld [vmem:[%s2267_s2 + $0x128] sm:$0xff]  ;;  %v185_v19 = vmul.f32 %v121_v10, %v57_v9 }
  0x33   :  { %v345_v31 = vmul.f32 %v1712_v24, %v1688_v11  ;;  %vm350_vm1 = vweird.f32 %v1712_v24  ;;  %v310_v6 = vadd.f32 %v246_v62, %v182_v60  ;;  %v187_v13 = vmul.f32 %v123_v5, %v59_v4  ;;  %v251_v15 = vld [vmem:[%s2267_s2 + $0x130] sm:$0xff]  ;;  %v249_v22 = vld [vmem:[%s2267_s2 + $0x120] sm:$0xff]  ;;  %v62_v27 = vld [vmem:[%s2266_s1 + $0x148] sm:$0xff] }
  0x34   :  { %vm1779_vm2 = vmor %vm349_vm0, %vm350_vm1  ;;  %v313_v29 = vadd.f32 %v249_v22, %v185_v19  ;;  %v61_v30 = vld [vmem:[%s2266_s1 + $0x140] sm:$0xff]  ;;  %v60_v35 = vld [vmem:[%s2266_s1 + $0x138] sm:$0xff] }
  0x35   :  { %v346_v38 = vsub.f32 1.0, %v345_v31  ;;  %v125_v31 = vld [vmem:[%s2265_s0 + $0x140] sm:$0xff]  ;;  %v124_v36 = vld [vmem:[%s2265_s0 + $0x138] sm:$0xff]  ;;  %v63_v61 = vld [vmem:[%s2266_s1 + $0x150] sm:$0xff] }
  0x36   :  { %v253_v45 = vld [vmem:[%s2267_s2 + $0x140] sm:$0xff]  ;;  %v252_v49 = vld [vmem:[%s2267_s2 + $0x138] sm:$0xff]  ;;  %v127_v62 = vld [vmem:[%s2265_s0 + $0x150] sm:$0xff] }
  0x37   :  { %478 = vperm.xlu2 %1241, %v297_v39   ;;  %v244_v39 = vld [vmem:[%s2267_s2 + $0xf8] sm:$0xff]  ;;  %v347_v46 = vmul.f32 %v1712_v24, %v346_v38  ;;  %v369_v38 = vand.u32 2147483647, %v1735_v34  ;;  %v129_v56 = vld [vmem:[%s2265_s0 + $0x160] sm:$0xff]  ;;  %v255_v10 = vld [vmem:[%s2267_s2 + $0x150] sm:$0xff] }
  0x38   :  { %473 = vperm.xlu1 %1240, %v296_v40   ;;  %v179_v40 = vmul.f32 %v115_v33, %v51_v32  ;;  %v371_v32 = vand.u32 2147483648, %v1735_v34  ;;  %v256_v5 = vld [vmem:[%s2267_s2 + $0x158] sm:$0xff]  ;;  %v67_v19 = vld [vmem:[%s2266_s1 + $0x170] sm:$0xff] }
  0x39   :  { %v348_v57 = vadd.f32 %v1712_v24, %v347_v46  ;;  %vm370_vm7 = vcmp.eq.f32.partialorder %v369_v38, 8.507059e+37 }
  0x3a   :  { %468 = vperm.xlu0 %1239, %v295_v43   ;;  %v308_v43 = vadd.f32 %v244_v39, %v180_v37  ;;  %v307_v47 = vadd.f32 %v243_v41, %v179_v40  ;;  %v372_v46 = vor.u32 1.1754944e-38, %v371_v32  ;;  %v258_v32 = vld [vmem:[%s2267_s2 + $0x168] sm:$0xff] }
  0x3b   :  { %v352_v3 = vsel %vm1779_vm2, %v1712_v24, %v348_v57  ;;  %v315_v24 = vadd.f32 %v251_v15, %v187_v13  ;;  %v70_v40 = vld [vmem:[%s2266_s1 + $0x188] sm:$0xff] }
  0x3f   :  { %493 = vperm.xlu2 %1241, %v300_v54   ;;  %v1769_v54 = vpop.eup %1245 }
  0x40   :  { %488 = vperm.xlu1 %1240, %v299_v55   ;;  %v248_v55 = vld [vmem:[%s2267_s2 + $0x118] sm:$0xff]  ;;  %v361_v1 = vmul.f32 %v1769_v54, %v1735_v34  ;;  %vm366_vm5 = vweird.f32 %v1769_v54  ;;  %v188_v34 = vmul.f32 %v124_v36, %v60_v35 }
  0x41   :  { %v312_v63 = vadd.f32 %v248_v55, %v184_v52  ;;  %vm1851_vm6 = vmor %vm365_vm4, %vm366_vm5  ;;  %v65_v55 = vld [vmem:[%s2266_s1 + $0x160] sm:$0xff] }
  0x42   :  { %483 = vperm.xlu0 %1239, %v298_v58   ;;  %v353_v58 = vand.u32 2147483647, %v1688_v11  ;;  %v316_v57 = vadd.f32 %v252_v49, %v188_v34  ;;  %v69_v34 = vld [vmem:[%s2266_s1 + $0x180] sm:$0xff] }
  0x44   :  { %vm354_vm3 = vcmp.eq.f32.partialorder %v353_v58, 8.507059e+37  ;;  %v64_v58 = vld [vmem:[%s2266_s1 + $0x158] sm:$0xff] }
  0x45   :  { %v357_v11 = vsel %vm354_vm3, %v356_v0, %v352_v3 }
  0x46   :  { %v1820_v20 = vperm.slane %v357_v11, 0 }
  0x47   :  { %508 = vperm.xlu2 %1241, %v303_v7   ;;  %v58_v7 = vld [vmem:[%s2266_s1 + $0x128] sm:$0xff] }
  0x48   :  { %503 = vperm.xlu1 %1240, %v302_v8   ;;  %v122_v8 = vld [vmem:[%s2265_s0 + $0x128] sm:$0xff] }
  0x49   :  { %v186_v16 = vmul.f32 %v122_v8, %v58_v7 }
  0x4a   :  { %498 = vperm.xlu0 %1239, %v301_v12   ;;  %v362_v12 = vsub.f32 1.0, %v361_v1  ;;  %v257_v1 = vld [vmem:[%s2267_s2 + $0x160] sm:$0xff] }
  0x4b   :  { %v314_v26 = vadd.f32 %v250_v18, %v186_v16  ;;  %v68_v16 = vld [vmem:[%s2266_s1 + $0x178] sm:$0xff] }
  0x4f   :  { %523 = vperm.xlu2 %1241, %v306_v23   ;;  %v363_v23 = vmul.f32 %v1769_v54, %v362_v12 }
  0x50   :  { %518 = vperm.xlu1 %1240, %v305_v25  }
  0x51   :  { %v364_v37 = vadd.f32 %v1769_v54, %v363_v23  ;;  %v66_v23 = vld [vmem:[%s2266_s1 + $0x168] sm:$0xff] }
  0x52   :  { %513 = vperm.xlu0 %1239, %v304_v28   ;;  %v126_v28 = vld [vmem:[%s2265_s0 + $0x148] sm:$0xff] }
  0x53   :  { %v190_v39 = vmul.f32 %v126_v28, %v62_v27  ;;  %v368_v50 = vsel %vm1851_vm6, %v1769_v54, %v364_v37  ;;  %v128_v54 = vld [vmem:[%s2265_s0 + $0x158] sm:$0xff] }
  0x54   :  { %v373_v59 = vsel %vm370_vm7, %v372_v46, %v368_v50  ;;  %v260_v27 = vld [vmem:[%s2267_s2 + $0x178] sm:$0xff]  ;;  %v133_v46 = vld [vmem:[%s2265_s0 + $0x180] sm:$0xff] }
  0x55   :  { %v1890_v3 = vperm.slane %v373_v59, 0 }
  0x57   :  { %538 = vperm.xlu2 %1241, %v309_v42   ;;  %v254_v42 = vld [vmem:[%s2267_s2 + $0x148] sm:$0xff] }
  0x58   :  { %533 = vperm.xlu1 %1240, %v308_v43   ;;  %v189_v43 = vmul.f32 %v125_v31, %v61_v30  ;;  %v318_v51 = vadd.f32 %v254_v42, %v190_v39  ;;  %v259_v30 = vld [vmem:[%s2267_s2 + $0x170] sm:$0xff] }
  0x59   :  { %v135_v39 = vld [vmem:[%s2265_s0 + $0x190] sm:$0xff] }
  0x5a   :  { %528 = vperm.xlu0 %1239, %v307_v47   ;;  %v317_v53 = vadd.f32 %v253_v45, %v189_v43 }
  0x5f   :  { %553 = vperm.xlu2 %1241, %v312_v63   ;;  %v193_v63 = vmul.f32 %v129_v56, %v65_v55 }
  0x60   :  { %548 = vperm.xlu1 %1240, %v311_v2   ;;  %v192_v2 = vmul.f32 %v128_v54, %v64_v58  ;;  %v262_v58 = vld [vmem:[%s2267_s2 + $0x188] sm:$0xff]  ;;  %v197_v54 = vmul.f32 %v133_v46, %v69_v34 }
  0x61   :  { %v399_v17 = vpop.permute.xlu2 %398  ;;  %v321_v12 = vadd.f32 %v257_v1, %v193_v63  ;;  %v74_v63 = vld [vmem:[%s2266_s1 + $0x1a8] sm:$0xff] }
  0x62   :  { %543 = vperm.xlu0 %1239, %v310_v6   ;;  %v703_v21 = vsub.f32 %v399_v17, %v1812_v14  ;;  %v191_v6 = vmul.f32 %v127_v62, %v63_v61  ;;  %v320_v15 = vadd.f32 %v256_v5, %v192_v2  ;;  %v132_v17 = vld [vmem:[%s2265_s0 + $0x178] sm:$0xff] }
  0x64   :  { %v770_v25 = vmul.f32 %v1820_v20, %v703_v21  ;;  %v319_v18 = vadd.f32 %v255_v10, %v191_v6  ;;  %v131_v21 = vld [vmem:[%s2265_s0 + $0x170] sm:$0xff]  ;;  %v73_v6 = vld [vmem:[%s2266_s1 + $0x1a0] sm:$0xff] }
  0x65   :  { %v195_v28 = vmul.f32 %v131_v21, %v67_v19 }
  0x66   :  { %v834_v33 = vmul.f32 -0.5, %v770_v25 }
  0x67   :  { %568 = vperm.xlu2 %1241, %v315_v24   ;;  %v130_v24 = vld [vmem:[%s2265_s0 + $0x168] sm:$0xff]  ;;  %v323_v49 = vadd.f32 %v259_v30, %v195_v28 }
  0x68   :  { %v898_v41 = vmul.f32 %v834_v33, %v770_v25  ;;  %563 = vperm.xlu1 %1240, %v314_v26   ;;  %v196_v25 = vmul.f32 %v132_v17, %v68_v16  ;;  %v194_v31 = vmul.f32 %v130_v24, %v66_v23  ;;  %v71_v33 = vld [vmem:[%s2266_s1 + $0x190] sm:$0xff]  ;;  %v136_v16 = vld [vmem:[%s2265_s0 + $0x198] sm:$0xff] }
  0x69   :  { %v404_v44 = vpop.permute.xlu2 %403 }
  0x6a   :  { %558 = vperm.xlu0 %1239, %v313_v29   ;;  %v966_v47 = vmul.f32 1.442695, %v898_v41  ;;  %v704_v48 = vsub.f32 %v404_v44, %v1812_v14  ;;  %v134_v41 = vld [vmem:[%s2265_s0 + $0x188] sm:$0xff]  ;;  %v324_v45 = vadd.f32 %v260_v27, %v196_v25 }
  0x6b   :  { %v266_v27 = vld [vmem:[%s2267_s2 + $0x1a8] sm:$0xff] }
  0x6c   :  { %1247 = vpow2.f32 %v966_v47  ;;  %v771_v52 = vmul.f32 %v1820_v20, %v704_v48 }
  0x6e   :  { %v835_v60 = vmul.f32 -0.5, %v771_v52 }
  0x6f   :  { %583 = vperm.xlu2 %1241, %v318_v51   ;;  %v322_v51 = vadd.f32 %v258_v32, %v194_v31 }
  0x70   :  { %v899_v0 = vmul.f32 %v835_v60, %v771_v52  ;;  %578 = vperm.xlu1 %1240, %v317_v53   ;;  %v199_v52 = vmul.f32 %v135_v39, %v71_v33  ;;  %v198_v53 = vmul.f32 %v134_v41, %v70_v40  ;;  %v261_v60 = vld [vmem:[%s2267_s2 + $0x180] sm:$0xff]  ;;  %v264_v33 = vld [vmem:[%s2267_s2 + $0x198] sm:$0xff] }
  0x71   :  { %v419_v4 = vpop.permute.xlu2 %418  ;;  %v140_v39 = vld [vmem:[%s2265_s0 + $0x1b8] sm:$0xff] }
  0x72   :  { %573 = vperm.xlu0 %1239, %v316_v57   ;;  %v1248_v7 = vpop.eup %1247  ;;  %v968_v8 = vmul.f32 1.442695, %v899_v0  ;;  %v707_v9 = vsub.f32 %v419_v4, %v1812_v14  ;;  %v263_v57 = vld [vmem:[%s2267_s2 + $0x190] sm:$0xff]  ;;  %v138_v0 = vld [vmem:[%s2265_s0 + $0x1a8] sm:$0xff]  ;;  %v326_v5 = vadd.f32 %v262_v58, %v198_v53 }
  0x73   :  { %v1093_v11 = vmul.f32 %v1248_v7, %v1890_v3  ;;  %v327_v4 = vadd.f32 %v263_v57, %v199_v52 }
  0x74   :  { %1249 = vpow2.f32 %v968_v8  ;;  %v774_v13 = vmul.f32 %v1820_v20, %v707_v9 }
  0x75   :  { %1157 = vst [vmem:[#allocation2 + $0x20] sm:$0xff] %v1093_v11 }
  0x76   :  { %v838_v22 = vmul.f32 -0.5, %v774_v13 }
  0x77   :  { %598 = vperm.xlu2 %1241, %v321_v12   ;;  %v325_v12 = vadd.f32 %v261_v60, %v197_v54 }
  0x78   :  { %v902_v26 = vmul.f32 %v838_v22, %v774_v13  ;;  %593 = vperm.xlu1 %1240, %v320_v15   ;;  %v137_v13 = vld [vmem:[%s2265_s0 + $0x1a0] sm:$0xff]  ;;  %v72_v15 = vld [vmem:[%s2266_s1 + $0x198] sm:$0xff]  ;;  %v202_v22 = vmul.f32 %v138_v0, %v74_v63 }
  0x79   :  { %v434_v29 = vpop.permute.xlu2 %433  ;;  %v389_v38 = vpop.permute.xlu1 %388  ;;  %v201_v28 = vmul.f32 %v137_v13, %v73_v6  ;;  %v200_v30 = vmul.f32 %v136_v16, %v72_v15  ;;  %v79_v13 = vld [vmem:[%s2266_s1 + $0x1d0] sm:$0xff] }
  0x7a   :  { %588 = vperm.xlu0 %1239, %v319_v18   ;;  %v1250_v35 = vpop.eup %1249  ;;  %v974_v36 = vmul.f32 1.442695, %v902_v26  ;;  %v710_v37 = vsub.f32 %v434_v29, %v1812_v14  ;;  %v701_v43 = vsub.f32 %v389_v38, %v1812_v14  ;;  %v265_v29 = vld [vmem:[%s2267_s2 + $0x1a0] sm:$0xff]  ;;  %v76_v38 = vld [vmem:[%s2266_s1 + $0x1b8] sm:$0xff]  ;;  %v143_v15 = vld [vmem:[%s2265_s0 + $0x1d0] sm:$0xff] }
  0x7b   :  { %v1094_v42 = vmul.f32 %v1250_v35, %v1890_v3  ;;  %v77_v35 = vld [vmem:[%s2266_s1 + $0x1c0] sm:$0xff]  ;;  %v329_v46 = vadd.f32 %v265_v29, %v201_v28  ;;  %v207_v29 = vmul.f32 %v143_v15, %v79_v13 }
  0x7c   :  { %v379_v44 = vpop.permute.xlu0 %378  ;;  %1251 = vpow2.f32 %v974_v36  ;;  %v777_v47 = vmul.f32 %v1820_v20, %v710_v37  ;;  %v768_v50 = vmul.f32 %v1820_v20, %v701_v43  ;;  %v141_v36 = vld [vmem:[%s2265_s0 + $0x1c0] sm:$0xff]  ;;  %v75_v43 = vld [vmem:[%s2266_s1 + $0x1b0] sm:$0xff] }
  0x7d   :  { %v699_v48 = vsub.f32 %v379_v44, %v1812_v14  ;;  %1158 = vst [vmem:[#allocation2 + $0x28] sm:$0xff] %v1094_v42  ;;  %v330_v42 = vadd.f32 %v266_v27, %v202_v22  ;;  %v139_v44 = vld [vmem:[%s2265_s0 + $0x1b0] sm:$0xff] }
  0x7e   :  { %v841_v55 = vmul.f32 -0.5, %v777_v47  ;;  %v832_v59 = vmul.f32 -0.5, %v768_v50  ;;  %v203_v60 = vmul.f32 %v139_v44, %v75_v43 }
  0x7f   :  { %v766_v56 = vmul.f32 %v1820_v20, %v699_v48  ;;  %613 = vperm.xlu2 %1241, %v324_v45   ;;  %v205_v48 = vmul.f32 %v141_v36, %v77_v35 }
  0x80   :  { %v905_v61 = vmul.f32 %v841_v55, %v777_v47  ;;  %608 = vperm.xlu1 %1240, %v323_v49   ;;  %v896_v1 = vmul.f32 %v832_v59, %v768_v50  ;;  %v328_v47 = vadd.f32 %v264_v33, %v200_v30  ;;  %v204_v55 = vmul.f32 %v140_v39, %v76_v38  ;;  %v142_v38 = vld [vmem:[%s2265_s0 + $0x1c8] sm:$0xff] }
  0x81   :  { %v830_v62 = vmul.f32 -0.5, %v766_v56  ;;  %v449_v2 = vpop.permute.xlu2 %448  ;;  %v394_v11 = vpop.permute.xlu1 %393 }
  0x82   :  { %603 = vperm.xlu0 %1239, %v322_v51   ;;  %v1252_v7 = vpop.eup %1251  ;;  %v980_v8 = vmul.f32 1.442695, %v905_v61  ;;  %v713_v10 = vsub.f32 %v449_v2, %v1812_v14  ;;  %v962_v18 = vmul.f32 1.442695, %v896_v1  ;;  %v702_v19 = vsub.f32 %v394_v11, %v1812_v14 }
  0x83   :  { %v894_v9 = vmul.f32 %v830_v62, %v766_v56  ;;  %v1097_v17 = vmul.f32 %v1252_v7, %v1890_v3  ;;  %v268_v7 = vld [vmem:[%s2267_s2 + $0x1b8] sm:$0xff] }
  0x84   :  { %v384_v21 = vpop.permute.xlu0 %383  ;;  %1253 = vpow2.f32 %v980_v8  ;;  %v780_v24 = vmul.f32 %v1820_v20, %v713_v10  ;;  %v769_v26 = vmul.f32 %v1820_v20, %v702_v19  ;;  %v267_v8 = vld [vmem:[%s2267_s2 + $0x1b0] sm:$0xff]  ;;  %v332_v22 = vadd.f32 %v268_v7, %v204_v55 }
  0x85   :  { %v958_v23 = vmul.f32 1.442695, %v894_v9  ;;  %v700_v25 = vsub.f32 %v384_v21, %v1812_v14  ;;  %1161 = vst [vmem:[#allocation2 + $0x40] sm:$0xff] %v1097_v17  ;;  %1255 = vpow2.f32 %v962_v18  ;;  %v80_v9 = vld [vmem:[%s2266_s1 + $0x1d8] sm:$0xff]  ;;  %v83_v55 = vld [vmem:[%s2266_s1 + $0x1f0] sm:$0xff] }
  0x86   :  { %v844_v31 = vmul.f32 -0.5, %v780_v24  ;;  %v833_v37 = vmul.f32 -0.5, %v769_v26 }
  0x87   :  { %1257 = vpow2.f32 %v958_v23  ;;  %v767_v32 = vmul.f32 %v1820_v20, %v700_v25  ;;  %628 = vperm.xlu2 %1241, %v327_v4   ;;  %v331_v23 = vadd.f32 %v267_v8, %v203_v60 }
  0x88   :  { %v908_v40 = vmul.f32 %v844_v31, %v780_v24  ;;  %623 = vperm.xlu1 %1240, %v326_v5   ;;  %v897_v45 = vmul.f32 %v833_v37, %v769_v26  ;;  %v269_v5 = vld [vmem:[%s2267_s2 + $0x1c0] sm:$0xff]  ;;  %v78_v37 = vld [vmem:[%s2266_s1 + $0x1c8] sm:$0xff] }
  0x89   :  { %v831_v41 = vmul.f32 -0.5, %v767_v32  ;;  %v464_v34 = vpop.permute.xlu2 %463  ;;  %v333_v17 = vadd.f32 %v269_v5, %v205_v48  ;;  %v271_v48 = vld [vmem:[%s2267_s2 + $0x1d0] sm:$0xff] }
  0x8a   :  { %618 = vperm.xlu0 %1239, %v325_v12   ;;  %v1254_v49 = vpop.eup %1253  ;;  %v986_v50 = vmul.f32 1.442695, %v908_v40  ;;  %v716_v52 = vsub.f32 %v464_v34, %v1812_v14  ;;  %v414_v53 = vpop.permute.xlu1 %413  ;;  %v964_v58 = vmul.f32 1.442695, %v897_v45  ;;  %v144_v12 = vld [vmem:[%s2265_s0 + $0x1d8] sm:$0xff] }
  0x8b   :  { %v895_v51 = vmul.f32 %v831_v41, %v767_v32  ;;  %v1256_v56 = vpop.eup %1255  ;;  %v1100_v57 = vmul.f32 %v1254_v49, %v1890_v3  ;;  %v706_v54 = vsub.f32 %v414_v53, %v1812_v14  ;;  %v208_v28 = vmul.f32 %v144_v12, %v80_v9  ;;  %v145_v12 = vld [vmem:[%s2265_s0 + $0x1e0] sm:$0xff] }
  0x8c   :  { %v409_v59 = vpop.permute.xlu0 %408  ;;  %v1091_v62 = vmul.f32 %v1256_v56, %v1890_v3  ;;  %1259 = vpow2.f32 %v986_v50  ;;  %v783_v0 = vmul.f32 %v1820_v20, %v716_v52  ;;  %v206_v49 = vmul.f32 %v142_v38, %v78_v37  ;;  %v147_v56 = vld [vmem:[%s2265_s0 + $0x1f0] sm:$0xff] }
  0x8d   :  { %v1258_v61 = vpop.eup %1257  ;;  %v960_v63 = vmul.f32 1.442695, %v895_v51  ;;  %1164 = vst [vmem:[#allocation2 + $0x58] sm:$0xff] %v1100_v57  ;;  %1261 = vpow2.f32 %v964_v58  ;;  %v773_v2 = vmul.f32 %v1820_v20, %v706_v54  ;;  %v705_v4 = vsub.f32 %v409_v59, %v1812_v14  ;;  %v270_v51 = vld [vmem:[%s2267_s2 + $0x1c8] sm:$0xff] }
  0x8e   :  { %v1089_v1 = vmul.f32 %v1258_v61, %v1890_v3  ;;  %1155 = vst [vmem:[#allocation2 + $0x10] sm:$0xff] %v1091_v62  ;;  %v847_v6 = vmul.f32 -0.5, %v783_v0  ;;  %v335_v59 = vadd.f32 %v271_v48, %v207_v29  ;;  %v273_v29 = vld [vmem:[%s2267_s2 + $0x1e0] sm:$0xff] }
  0x8f   :  { %1263 = vpow2.f32 %v960_v63  ;;  %v837_v10 = vmul.f32 -0.5, %v773_v2  ;;  %v772_v11 = vmul.f32 %v1820_v20, %v705_v4  ;;  %643 = vperm.xlu2 %1241, %v330_v42   ;;  %v146_v4 = vld [vmem:[%s2265_s0 + $0x1e8] sm:$0xff] }
  0x90   :  { %1153 = vst [vmem:[#allocation2] sm:$0xff] %v1089_v1  ;;  %v911_v16 = vmul.f32 %v847_v6, %v783_v0  ;;  %638 = vperm.xlu1 %1240, %v329_v46   ;;  %v334_v1 = vadd.f32 %v270_v51, %v206_v49 }
  0x91   :  { %v901_v18 = vmul.f32 %v837_v10, %v773_v2  ;;  %v836_v19 = vmul.f32 -0.5, %v772_v11  ;;  %v479_v21 = vpop.permute.xlu2 %478  ;;  %v82_v2 = vld [vmem:[%s2266_s1 + $0x1e8] sm:$0xff]  ;;  %v211_v10 = vmul.f32 %v147_v56, %v83_v55 }
  0x92   :  { %633 = vperm.xlu0 %1239, %v328_v47   ;;  %v1260_v24 = vpop.eup %1259  ;;  %v992_v25 = vmul.f32 1.442695, %v911_v16  ;;  %v719_v26 = vsub.f32 %v479_v21, %v1812_v14  ;;  %v429_v27 = vpop.permute.xlu1 %428  ;;  %v272_v47 = vld [vmem:[%s2267_s2 + $0x1d8] sm:$0xff]  ;;  %v210_v21 = vmul.f32 %v146_v4, %v82_v2 }
  0x93   :  { %v1262_v30 = vpop.eup %1261  ;;  %v1103_v31 = vmul.f32 %v1260_v24, %v1890_v3  ;;  %v972_v32 = vmul.f32 1.442695, %v901_v18  ;;  %v900_v33 = vmul.f32 %v836_v19, %v772_v11  ;;  %v709_v35 = vsub.f32 %v429_v27, %v1812_v14  ;;  %v81_v11 = vld [vmem:[%s2266_s1 + $0x1e0] sm:$0xff]  ;;  %v275_v24 = vld [vmem:[%s2267_s2 + $0x1f0] sm:$0xff] }
  0x94   :  { %v424_v36 = vpop.permute.xlu0 %423  ;;  %v1092_v40 = vmul.f32 %v1262_v30, %v1890_v3  ;;  %1265 = vpow2.f32 %v992_v25  ;;  %v786_v41 = vmul.f32 %v1820_v20, %v719_v26  ;;  %v336_v54 = vadd.f32 %v272_v47, %v208_v28  ;;  %v274_v28 = vld [vmem:[%s2267_s2 + $0x1e8] sm:$0xff] }
  0x95   :  { %v1264_v39 = vpop.eup %1263  ;;  %v708_v42 = vsub.f32 %v424_v36, %v1812_v14  ;;  %1167 = vst [vmem:[#allocation2 + $0x70] sm:$0xff] %v1103_v31  ;;  %1267 = vpow2.f32 %v972_v32  ;;  %v970_v44 = vmul.f32 1.442695, %v900_v33  ;;  %v776_v45 = vmul.f32 %v1820_v20, %v709_v35 }
  0x96   :  { %v1090_v43 = vmul.f32 %v1264_v39, %v1890_v3  ;;  %1156 = vst [vmem:[#allocation2 + $0x18] sm:$0xff] %v1092_v40  ;;  %v850_v34 = vmul.f32 -0.5, %v786_v41  ;;  %v209_v25 = vmul.f32 %v145_v12, %v81_v11  ;;  %v339_v35 = vadd.f32 %v275_v24, %v211_v10 }
  0x97   :  { %v775_v46 = vmul.f32 %v1820_v20, %v708_v42  ;;  %1269 = vpow2.f32 %v970_v44  ;;  %v840_v50 = vmul.f32 -0.5, %v776_v45  ;;  %658 = vperm.xlu2 %1241, %v333_v17   ;;  %v338_v40 = vadd.f32 %v274_v28, %v210_v21 }
  0x98   :  { %1154 = vst [vmem:[#allocation2 + $0x8] sm:$0xff] %v1090_v43  ;;  %v914_v52 = vmul.f32 %v850_v34, %v786_v41  ;;  %653 = vperm.xlu1 %1240, %v332_v22   ;;  %v337_v41 = vadd.f32 %v273_v29, %v209_v25 }
  0x99   :  { %v839_v53 = vmul.f32 -0.5, %v775_v46  ;;  %v904_v57 = vmul.f32 %v840_v50, %v776_v45  ;;  %v494_v58 = vpop.permute.xlu2 %493 }
  0x9a   :  { %648 = vperm.xlu0 %1239, %v331_v23   ;;  %v1266_v60 = vpop.eup %1265  ;;  %v998_v61 = vmul.f32 1.442695, %v914_v52  ;;  %v722_v63 = vsub.f32 %v494_v58, %v1812_v14  ;;  %v444_v0 = vpop.permute.xlu1 %443  ;;  %v148_v58 = vld [vmem:[%s2265_s0 + $0x1f8] sm:$0xff] }
  0x9b   :  { %v903_v62 = vmul.f32 %v839_v53, %v775_v46  ;;  %v1268_v5 = vpop.eup %1267  ;;  %v1106_v6 = vmul.f32 %v1266_v60, %v1890_v3  ;;  %v978_v7 = vmul.f32 1.442695, %v904_v57  ;;  %v712_v8 = vsub.f32 %v444_v0, %v1812_v14  ;;  %v84_v57 = vld [vmem:[%s2266_s1 + $0x1f8] sm:$0xff] }
  0x9c   :  { %v439_v9 = vpop.permute.xlu0 %438  ;;  %v1096_v13 = vmul.f32 %v1268_v5, %v1890_v3  ;;  %1271 = vpow2.f32 %v998_v61  ;;  %v789_v16 = vmul.f32 %v1820_v20, %v722_v63  ;;  %v212_v63 = vmul.f32 %v148_v58, %v84_v57 }
  0x9d   :  { %v976_v15 = vmul.f32 1.442695, %v903_v62  ;;  %v1270_v17 = vpop.eup %1269  ;;  %1170 = vst [vmem:[#allocation2 + $0x88] sm:$0xff] %v1106_v6  ;;  %1273 = vpow2.f32 %v978_v7  ;;  %v779_v18 = vmul.f32 %v1820_v20, %v712_v8  ;;  %v711_v19 = vsub.f32 %v439_v9, %v1812_v14  ;;  %v276_v6 = vld [vmem:[%s2267_s2 + $0x1f8] sm:$0xff] }
  0x9e   :  { %1160 = vst [vmem:[#allocation2 + $0x38] sm:$0xff] %v1096_v13  ;;  %v1095_v22 = vmul.f32 %v1270_v17, %v1890_v3  ;;  %v853_v23 = vmul.f32 -0.5, %v789_v16 }
  0x9f   :  { %1275 = vpow2.f32 %v976_v15  ;;  %v843_v26 = vmul.f32 -0.5, %v779_v18  ;;  %v778_v27 = vmul.f32 %v1820_v20, %v711_v19  ;;  %673 = vperm.xlu2 %1241, %v336_v54   ;;  %v340_v19 = vadd.f32 %v276_v6, %v212_v63 }
  0xa0   :  { %1159 = vst [vmem:[#allocation2 + $0x30] sm:$0xff] %v1095_v22  ;;  %v917_v30 = vmul.f32 %v853_v23, %v789_v16  ;;  %668 = vperm.xlu1 %1240, %v335_v59  }
  0xa1   :  { %v907_v31 = vmul.f32 %v843_v26, %v779_v18  ;;  %v842_v32 = vmul.f32 -0.5, %v778_v27  ;;  %v509_v33 = vpop.permute.xlu2 %508 }
  0xa2   :  { %663 = vperm.xlu0 %1239, %v334_v1   ;;  %v1272_v36 = vpop.eup %1271  ;;  %v1004_v37 = vmul.f32 1.442695, %v917_v30  ;;  %v725_v38 = vsub.f32 %v509_v33, %v1812_v14  ;;  %v459_v39 = vpop.permute.xlu1 %458 }
  0xa3   :  { %v1274_v42 = vpop.eup %1273  ;;  %v1109_v43 = vmul.f32 %v1272_v36, %v1890_v3  ;;  %v984_v44 = vmul.f32 1.442695, %v907_v31  ;;  %v906_v45 = vmul.f32 %v842_v32, %v778_v27  ;;  %v715_v34 = vsub.f32 %v459_v39, %v1812_v14 }
  0xa4   :  { %v454_v46 = vpop.permute.xlu0 %453  ;;  %v1099_v48 = vmul.f32 %v1274_v42, %v1890_v3  ;;  %1277 = vpow2.f32 %v1004_v37  ;;  %v792_v49 = vmul.f32 %v1820_v20, %v725_v38 }
  0xa5   :  { %v1276_v47 = vpop.eup %1275  ;;  %v714_v50 = vsub.f32 %v454_v46, %v1812_v14  ;;  %1173 = vst [vmem:[#allocation2 + $0xa0] sm:$0xff] %v1109_v43  ;;  %1279 = vpow2.f32 %v984_v44  ;;  %v982_v52 = vmul.f32 1.442695, %v906_v45  ;;  %v782_v53 = vmul.f32 %v1820_v20, %v715_v34 }
  0xa6   :  { %v1098_v51 = vmul.f32 %v1276_v47, %v1890_v3  ;;  %1163 = vst [vmem:[#allocation2 + $0x50] sm:$0xff] %v1099_v48  ;;  %v856_v55 = vmul.f32 -0.5, %v792_v49 }
  0xa7   :  { %v781_v56 = vmul.f32 %v1820_v20, %v714_v50  ;;  %1281 = vpow2.f32 %v982_v52  ;;  %v846_v54 = vmul.f32 -0.5, %v782_v53  ;;  %688 = vperm.xlu2 %1241, %v339_v35  }
  0xa8   :  { %1162 = vst [vmem:[#allocation2 + $0x48] sm:$0xff] %v1098_v51  ;;  %v920_v59 = vmul.f32 %v856_v55, %v792_v49  ;;  %683 = vperm.xlu1 %1240, %v338_v40  }
  0xa9   :  { %v845_v60 = vmul.f32 -0.5, %v781_v56  ;;  %v910_v61 = vmul.f32 %v846_v54, %v782_v53  ;;  %v524_v62 = vpop.permute.xlu2 %523 }
  0xaa   :  { %678 = vperm.xlu0 %1239, %v337_v41   ;;  %v1278_v0 = vpop.eup %1277  ;;  %v1010_v1 = vmul.f32 1.442695, %v920_v59  ;;  %v728_v4 = vsub.f32 %v524_v62, %v1812_v14  ;;  %v474_v5 = vpop.permute.xlu1 %473 }
  0xab   :  { %v909_v2 = vmul.f32 %v845_v60, %v781_v56  ;;  %v1280_v7 = vpop.eup %1279  ;;  %v1112_v8 = vmul.f32 %v1278_v0, %v1890_v3  ;;  %v990_v9 = vmul.f32 1.442695, %v910_v61  ;;  %v718_v10 = vsub.f32 %v474_v5, %v1812_v14 }
  0xac   :  { %v469_v11 = vpop.permute.xlu0 %468  ;;  %v1102_v12 = vmul.f32 %v1280_v7, %v1890_v3  ;;  %1283 = vpow2.f32 %v1010_v1  ;;  %v795_v15 = vmul.f32 %v1820_v20, %v728_v4 }
  0xad   :  { %v988_v13 = vmul.f32 1.442695, %v909_v2  ;;  %v1282_v16 = vpop.eup %1281  ;;  %1176 = vst [vmem:[#allocation2 + $0xb8] sm:$0xff] %v1112_v8  ;;  %1285 = vpow2.f32 %v990_v9  ;;  %v785_v17 = vmul.f32 %v1820_v20, %v718_v10  ;;  %v717_v18 = vsub.f32 %v469_v11, %v1812_v14 }
  0xae   :  { %1166 = vst [vmem:[#allocation2 + $0x68] sm:$0xff] %v1102_v12  ;;  %v1101_v21 = vmul.f32 %v1282_v16, %v1890_v3  ;;  %v859_v22 = vmul.f32 -0.5, %v795_v15 }
  0xaf   :  { %1287 = vpow2.f32 %v988_v13  ;;  %v849_v23 = vmul.f32 -0.5, %v785_v17  ;;  %v784_v24 = vmul.f32 %v1820_v20, %v717_v18 }
  0xb0   :  { %1165 = vst [vmem:[#allocation2 + $0x60] sm:$0xff] %v1101_v21  ;;  %v923_v25 = vmul.f32 %v859_v22, %v795_v15 }
  0xb1   :  { %v913_v26 = vmul.f32 %v849_v23, %v785_v17  ;;  %v848_v27 = vmul.f32 -0.5, %v784_v24  ;;  %v539_v28 = vpop.permute.xlu2 %538 }
  0xb2   :  { %693 = vperm.xlu0 %1239, %v340_v19   ;;  %v1284_v29 = vpop.eup %1283  ;;  %v1016_v30 = vmul.f32 1.442695, %v923_v25  ;;  %v731_v31 = vsub.f32 %v539_v28, %v1812_v14  ;;  %v489_v32 = vpop.permute.xlu1 %488 }
  0xb3   :  { %v1286_v33 = vpop.eup %1285  ;;  %v1115_v35 = vmul.f32 %v1284_v29, %v1890_v3  ;;  %v996_v36 = vmul.f32 1.442695, %v913_v26  ;;  %v912_v37 = vmul.f32 %v848_v27, %v784_v24  ;;  %v721_v38 = vsub.f32 %v489_v32, %v1812_v14 }
  0xb4   :  { %v484_v39 = vpop.permute.xlu0 %483  ;;  %v1105_v41 = vmul.f32 %v1286_v33, %v1890_v3  ;;  %1289 = vpow2.f32 %v1016_v30  ;;  %v798_v42 = vmul.f32 %v1820_v20, %v731_v31 }
  0xb5   :  { %v1288_v40 = vpop.eup %1287  ;;  %v720_v43 = vsub.f32 %v484_v39, %v1812_v14  ;;  %1179 = vst [vmem:[#allocation2 + $0xd0] sm:$0xff] %v1115_v35  ;;  %1291 = vpow2.f32 %v996_v36  ;;  %v994_v45 = vmul.f32 1.442695, %v912_v37  ;;  %v788_v34 = vmul.f32 %v1820_v20, %v721_v38 }
  0xb6   :  { %v1104_v44 = vmul.f32 %v1288_v40, %v1890_v3  ;;  %1169 = vst [vmem:[#allocation2 + $0x80] sm:$0xff] %v1105_v41  ;;  %v862_v46 = vmul.f32 -0.5, %v798_v42 }
  0xb7   :  { %v787_v47 = vmul.f32 %v1820_v20, %v720_v43  ;;  %1293 = vpow2.f32 %v994_v45  ;;  %v852_v48 = vmul.f32 -0.5, %v788_v34 }
  0xb8   :  { %1168 = vst [vmem:[#allocation2 + $0x78] sm:$0xff] %v1104_v44  ;;  %v926_v49 = vmul.f32 %v862_v46, %v798_v42 }
  0xb9   :  { %v851_v50 = vmul.f32 -0.5, %v787_v47  ;;  %v916_v51 = vmul.f32 %v852_v48, %v788_v34  ;;  %v554_v52 = vpop.permute.xlu2 %553 }
  0xba   :  { %v1290_v53 = vpop.eup %1289  ;;  %v1022_v55 = vmul.f32 1.442695, %v926_v49  ;;  %v734_v57 = vsub.f32 %v554_v52, %v1812_v14  ;;  %v504_v58 = vpop.permute.xlu1 %503 }
  0xbb   :  { %v915_v56 = vmul.f32 %v851_v50, %v787_v47  ;;  %v1292_v54 = vpop.eup %1291  ;;  %v1118_v59 = vmul.f32 %v1290_v53, %v1890_v3  ;;  %v1002_v60 = vmul.f32 1.442695, %v916_v51  ;;  %v724_v61 = vsub.f32 %v504_v58, %v1812_v14 }
  0xbc   :  { %v499_v62 = vpop.permute.xlu0 %498  ;;  %v1108_v63 = vmul.f32 %v1292_v54, %v1890_v3  ;;  %1295 = vpow2.f32 %v1022_v55  ;;  %v801_v1 = vmul.f32 %v1820_v20, %v734_v57 }
  0xbd   :  { %v1000_v0 = vmul.f32 1.442695, %v915_v56  ;;  %v1294_v2 = vpop.eup %1293  ;;  %1182 = vst [vmem:[#allocation2 + $0xe8] sm:$0xff] %v1118_v59  ;;  %1297 = vpow2.f32 %v1002_v60  ;;  %v791_v4 = vmul.f32 %v1820_v20, %v724_v61  ;;  %v723_v5 = vsub.f32 %v499_v62, %v1812_v14 }
  0xbe   :  { %1172 = vst [vmem:[#allocation2 + $0x98] sm:$0xff] %v1108_v63  ;;  %v1107_v6 = vmul.f32 %v1294_v2, %v1890_v3  ;;  %v865_v7 = vmul.f32 -0.5, %v801_v1  ;;  %v2170_v2 = vld [vmem:[%s2268_s3] ss:$0 sm:$0xff]  ;;  %s1403_s3 = smov [#allocation2]  }
  0xbf   :  { %1299 = vpow2.f32 %v1000_v0  ;;  %v855_v8 = vmul.f32 -0.5, %v791_v4  ;;  %v790_v9 = vmul.f32 %v1820_v20, %v723_v5  ;;  %s1221_s21 = sshll.u32 %s1403_s3, 4  ;;  %s1222_s21 = int_to_ptr.vmem [resolvable:$true] %s1221_s21 }
  0xc0   :  { %1171 = vst [vmem:[#allocation2 + $0x90] sm:$0xff] %v1107_v6  ;;  %v929_v10 = vmul.f32 %v865_v7, %v801_v1 }
  0xc1   :  { %v919_v11 = vmul.f32 %v855_v8, %v791_v4  ;;  %v854_v12 = vmul.f32 -0.5, %v790_v9  ;;  %v569_v13 = vpop.permute.xlu2 %568 }
  0xc2   :  { %v1296_v15 = vpop.eup %1295  ;;  %v1028_v16 = vmul.f32 1.442695, %v929_v10  ;;  %v737_v17 = vsub.f32 %v569_v13, %v1812_v14  ;;  %v519_v18 = vpop.permute.xlu1 %518 }
  0xc3   :  { %v1298_v19 = vpop.eup %1297  ;;  %v1121_v21 = vmul.f32 %v1296_v15, %v1890_v3  ;;  %v1008_v22 = vmul.f32 1.442695, %v919_v11  ;;  %v918_v23 = vmul.f32 %v854_v12, %v790_v9  ;;  %v727_v24 = vsub.f32 %v519_v18, %v1812_v14 }
  0xc4   :  { %v514_v25 = vpop.permute.xlu0 %513  ;;  %v1111_v27 = vmul.f32 %v1298_v19, %v1890_v3  ;;  %1301 = vpow2.f32 %v1028_v16  ;;  %v804_v28 = vmul.f32 %v1820_v20, %v737_v17 }
  0xc5   :  { %v1300_v26 = vpop.eup %1299  ;;  %v726_v29 = vsub.f32 %v514_v25, %v1812_v14  ;;  %1185 = vst [vmem:[#allocation2 + $0x100] sm:$0xff] %v1121_v21  ;;  %1303 = vpow2.f32 %v1008_v22  ;;  %v1006_v31 = vmul.f32 1.442695, %v918_v23  ;;  %v794_v32 = vmul.f32 %v1820_v20, %v727_v24 }
  0xc6   :  { %v1110_v30 = vmul.f32 %v1300_v26, %v1890_v3  ;;  %1175 = vst [vmem:[#allocation2 + $0xb0] sm:$0xff] %v1111_v27  ;;  %v868_v33 = vmul.f32 -0.5, %v804_v28 }
  0xc7   :  { %v793_v35 = vmul.f32 %v1820_v20, %v726_v29  ;;  %1305 = vpow2.f32 %v1006_v31  ;;  %v858_v36 = vmul.f32 -0.5, %v794_v32 }
  0xc8   :  { %1174 = vst [vmem:[#allocation2 + $0xa8] sm:$0xff] %v1110_v30  ;;  %v932_v37 = vmul.f32 %v868_v33, %v804_v28 }
  0xc9   :  { %v857_v38 = vmul.f32 -0.5, %v793_v35  ;;  %v922_v39 = vmul.f32 %v858_v36, %v794_v32  ;;  %v584_v40 = vpop.permute.xlu2 %583 }
  0xca   :  { %v1302_v41 = vpop.eup %1301  ;;  %v1034_v42 = vmul.f32 1.442695, %v932_v37  ;;  %v740_v44 = vsub.f32 %v584_v40, %v1812_v14  ;;  %v534_v45 = vpop.permute.xlu1 %533 }
  0xcb   :  { %v921_v43 = vmul.f32 %v857_v38, %v793_v35  ;;  %v1304_v34 = vpop.eup %1303  ;;  %v1124_v46 = vmul.f32 %v1302_v41, %v1890_v3  ;;  %v1014_v47 = vmul.f32 1.442695, %v922_v39  ;;  %v730_v48 = vsub.f32 %v534_v45, %v1812_v14 }
  0xcc   :  { %v529_v49 = vpop.permute.xlu0 %528  ;;  %v1114_v50 = vmul.f32 %v1304_v34, %v1890_v3  ;;  %1307 = vpow2.f32 %v1034_v42  ;;  %v807_v52 = vmul.f32 %v1820_v20, %v740_v44 }
  0xcd   :  { %v1012_v51 = vmul.f32 1.442695, %v921_v43  ;;  %v1306_v53 = vpop.eup %1305  ;;  %1188 = vst [vmem:[#allocation2 + $0x118] sm:$0xff] %v1124_v46  ;;  %1309 = vpow2.f32 %v1014_v47  ;;  %v797_v55 = vmul.f32 %v1820_v20, %v730_v48  ;;  %v729_v56 = vsub.f32 %v529_v49, %v1812_v14 }
  0xce   :  { %1178 = vst [vmem:[#allocation2 + $0xc8] sm:$0xff] %v1114_v50  ;;  %v1113_v57 = vmul.f32 %v1306_v53, %v1890_v3  ;;  %v871_v58 = vmul.f32 -0.5, %v807_v52 }
  0xcf   :  { %1311 = vpow2.f32 %v1012_v51  ;;  %v861_v54 = vmul.f32 -0.5, %v797_v55  ;;  %v796_v59 = vmul.f32 %v1820_v20, %v729_v56 }
  0xd0   :  { %1177 = vst [vmem:[#allocation2 + $0xc0] sm:$0xff] %v1113_v57  ;;  %v935_v60 = vmul.f32 %v871_v58, %v807_v52 }
  0xd1   :  { %v925_v61 = vmul.f32 %v861_v54, %v797_v55  ;;  %v860_v62 = vmul.f32 -0.5, %v796_v59  ;;  %v599_v63 = vpop.permute.xlu2 %598 }
  0xd2   :  { %v1308_v0 = vpop.eup %1307  ;;  %v1040_v1 = vmul.f32 1.442695, %v935_v60  ;;  %v743_v14 = vsub.f32 %v599_v63, %v2170_v2  ;;  %v549_v4 = vpop.permute.xlu1 %548 }
  0xd3   :  { %v1310_v5 = vpop.eup %1309  ;;  %v1127_v6 = vmul.f32 %v1308_v0, %v1890_v3  ;;  %v1020_v7 = vmul.f32 1.442695, %v925_v61  ;;  %v924_v8 = vmul.f32 %v860_v62, %v796_v59  ;;  %v733_v9 = vsub.f32 %v549_v4, %v2170_v2 }
  0xd4   :  { %v544_v10 = vpop.permute.xlu0 %543  ;;  %v1117_v12 = vmul.f32 %v1310_v5, %v1890_v3  ;;  %1313 = vpow2.f32 %v1040_v1  ;;  %v810_v13 = vmul.f32 %v1820_v20, %v743_v14 }
  0xd5   :  { %v1312_v11 = vpop.eup %1311  ;;  %v732_v15 = vsub.f32 %v544_v10, %v2170_v2  ;;  %1191 = vst [vmem:[#allocation2 + $0x130] sm:$0xff] %v1127_v6  ;;  %1315 = vpow2.f32 %v1020_v7  ;;  %v1018_v17 = vmul.f32 1.442695, %v924_v8  ;;  %v800_v18 = vmul.f32 %v1820_v20, %v733_v9 }
  0xd6   :  { %v1116_v16 = vmul.f32 %v1312_v11, %v1890_v3  ;;  %1181 = vst [vmem:[#allocation2 + $0xe0] sm:$0xff] %v1117_v12  ;;  %v874_v19 = vmul.f32 -0.5, %v810_v13 }
  0xd7   :  { %v799_v21 = vmul.f32 %v1820_v20, %v732_v15  ;;  %1317 = vpow2.f32 %v1018_v17  ;;  %v864_v22 = vmul.f32 -0.5, %v800_v18 }
  0xd8   :  { %1180 = vst [vmem:[#allocation2 + $0xd8] sm:$0xff] %v1116_v16  ;;  %v938_v23 = vmul.f32 %v874_v19, %v810_v13 }
  0xd9   :  { %v863_v24 = vmul.f32 -0.5, %v799_v21  ;;  %v928_v25 = vmul.f32 %v864_v22, %v800_v18  ;;  %v614_v26 = vpop.permute.xlu2 %613 }
  0xda   :  { %v1314_v27 = vpop.eup %1313  ;;  %v1046_v28 = vmul.f32 1.442695, %v938_v23  ;;  %v746_v30 = vsub.f32 %v614_v26, %v2170_v2  ;;  %v564_v31 = vpop.permute.xlu1 %563 }
  0xdb   :  { %v927_v29 = vmul.f32 %v863_v24, %v799_v21  ;;  %v1316_v32 = vpop.eup %1315  ;;  %v1130_v33 = vmul.f32 %v1314_v27, %v1890_v3  ;;  %v1026_v35 = vmul.f32 1.442695, %v928_v25  ;;  %v736_v36 = vsub.f32 %v564_v31, %v2170_v2 }
  0xdc   :  { %v559_v37 = vpop.permute.xlu0 %558  ;;  %v1120_v38 = vmul.f32 %v1316_v32, %v1890_v3  ;;  %1319 = vpow2.f32 %v1046_v28  ;;  %v813_v40 = vmul.f32 %v1820_v20, %v746_v30 }
  0xdd   :  { %v1024_v39 = vmul.f32 1.442695, %v927_v29  ;;  %v1318_v41 = vpop.eup %1317  ;;  %1194 = vst [vmem:[#allocation2 + $0x148] sm:$0xff] %v1130_v33  ;;  %1321 = vpow2.f32 %v1026_v35  ;;  %v803_v42 = vmul.f32 %v1820_v20, %v736_v36  ;;  %v735_v43 = vsub.f32 %v559_v37, %v2170_v2 }
  0xde   :  { %1184 = vst [vmem:[#allocation2 + $0xf8] sm:$0xff] %v1120_v38  ;;  %v1119_v44 = vmul.f32 %v1318_v41, %v1890_v3  ;;  %v877_v45 = vmul.f32 -0.5, %v813_v40 }
  0xdf   :  { %1323 = vpow2.f32 %v1024_v39  ;;  %v867_v34 = vmul.f32 -0.5, %v803_v42  ;;  %v802_v46 = vmul.f32 %v1820_v20, %v735_v43 }
  0xe0   :  { %1183 = vst [vmem:[#allocation2 + $0xf0] sm:$0xff] %v1119_v44  ;;  %v941_v47 = vmul.f32 %v877_v45, %v813_v40 }
  0xe1   :  { %v931_v48 = vmul.f32 %v867_v34, %v803_v42  ;;  %v866_v49 = vmul.f32 -0.5, %v802_v46  ;;  %v629_v50 = vpop.permute.xlu2 %628 }
  0xe2   :  { %v1320_v51 = vpop.eup %1319  ;;  %v1052_v52 = vmul.f32 1.442695, %v941_v47  ;;  %v749_v53 = vsub.f32 %v629_v50, %v2170_v2  ;;  %v579_v55 = vpop.permute.xlu1 %578 }
  0xe3   :  { %v1322_v56 = vpop.eup %1321  ;;  %v1133_v57 = vmul.f32 %v1320_v51, %v1890_v3  ;;  %v1032_v58 = vmul.f32 1.442695, %v931_v48  ;;  %v930_v54 = vmul.f32 %v866_v49, %v802_v46  ;;  %v739_v59 = vsub.f32 %v579_v55, %v2170_v2 }
  0xe4   :  { %v574_v60 = vpop.permute.xlu0 %573  ;;  %v1123_v62 = vmul.f32 %v1322_v56, %v1890_v3  ;;  %1325 = vpow2.f32 %v1052_v52  ;;  %v816_v63 = vmul.f32 %v1820_v20, %v749_v53 }
  0xe5   :  { %v1324_v61 = vpop.eup %1323  ;;  %v738_v0 = vsub.f32 %v574_v60, %v2170_v2  ;;  %1197 = vst [vmem:[#allocation2 + $0x160] sm:$0xff] %v1133_v57  ;;  %1327 = vpow2.f32 %v1032_v58  ;;  %v1030_v14 = vmul.f32 1.442695, %v930_v54  ;;  %v806_v4 = vmul.f32 %v1820_v20, %v739_v59 }
  0xe6   :  { %v1122_v1 = vmul.f32 %v1324_v61, %v1890_v3  ;;  %1187 = vst [vmem:[#allocation2 + $0x110] sm:$0xff] %v1123_v62  ;;  %v880_v5 = vmul.f32 -0.5, %v816_v63 }
  0xe7   :  { %v805_v6 = vmul.f32 %v1820_v20, %v738_v0  ;;  %1329 = vpow2.f32 %v1030_v14  ;;  %v870_v7 = vmul.f32 -0.5, %v806_v4 }
  0xe8   :  { %1186 = vst [vmem:[#allocation2 + $0x108] sm:$0xff] %v1122_v1  ;;  %v944_v8 = vmul.f32 %v880_v5, %v816_v63 }
  0xe9   :  { %v869_v9 = vmul.f32 -0.5, %v805_v6  ;;  %v934_v10 = vmul.f32 %v870_v7, %v806_v4  ;;  %v644_v11 = vpop.permute.xlu2 %643 }
  0xea   :  { %v1326_v12 = vpop.eup %1325  ;;  %v1058_v13 = vmul.f32 1.442695, %v944_v8  ;;  %v752_v16 = vsub.f32 %v644_v11, %v2170_v2  ;;  %v594_v17 = vpop.permute.xlu1 %593 }
  0xeb   :  { %v933_v15 = vmul.f32 %v869_v9, %v805_v6  ;;  %v1328_v18 = vpop.eup %1327  ;;  %v1136_v19 = vmul.f32 %v1326_v12, %v1890_v3  ;;  %v1038_v21 = vmul.f32 1.442695, %v934_v10  ;;  %v742_v22 = vsub.f32 %v594_v17, %v2170_v2 }
  0xec   :  { %v589_v23 = vpop.permute.xlu0 %588  ;;  %v1126_v24 = vmul.f32 %v1328_v18, %v1890_v3  ;;  %1331 = vpow2.f32 %v1058_v13  ;;  %v819_v26 = vmul.f32 %v1820_v20, %v752_v16 }
  0xed   :  { %v1036_v25 = vmul.f32 1.442695, %v933_v15  ;;  %v1330_v27 = vpop.eup %1329  ;;  %1200 = vst [vmem:[#allocation2 + $0x178] sm:$0xff] %v1136_v19  ;;  %1333 = vpow2.f32 %v1038_v21  ;;  %v809_v28 = vmul.f32 %v1820_v20, %v742_v22  ;;  %v741_v29 = vsub.f32 %v589_v23, %v2170_v2 }
  0xee   :  { %1190 = vst [vmem:[#allocation2 + $0x128] sm:$0xff] %v1126_v24  ;;  %v1125_v30 = vmul.f32 %v1330_v27, %v1890_v3  ;;  %v883_v31 = vmul.f32 -0.5, %v819_v26 }
  0xef   :  { %1335 = vpow2.f32 %v1036_v25  ;;  %v873_v32 = vmul.f32 -0.5, %v809_v28  ;;  %v808_v33 = vmul.f32 %v1820_v20, %v741_v29 }
  0xf0   :  { %1189 = vst [vmem:[#allocation2 + $0x120] sm:$0xff] %v1125_v30  ;;  %v947_v35 = vmul.f32 %v883_v31, %v819_v26 }
  0xf1   :  { %v937_v36 = vmul.f32 %v873_v32, %v809_v28  ;;  %v872_v37 = vmul.f32 -0.5, %v808_v33  ;;  %v659_v38 = vpop.permute.xlu2 %658 }
  0xf2   :  { %v1332_v39 = vpop.eup %1331  ;;  %v1064_v40 = vmul.f32 1.442695, %v947_v35  ;;  %v755_v41 = vsub.f32 %v659_v38, %v2170_v2  ;;  %v609_v42 = vpop.permute.xlu1 %608 }
  0xf3   :  { %v1334_v43 = vpop.eup %1333  ;;  %v1139_v44 = vmul.f32 %v1332_v39, %v1890_v3  ;;  %v1044_v45 = vmul.f32 1.442695, %v937_v36  ;;  %v936_v34 = vmul.f32 %v872_v37, %v808_v33  ;;  %v745_v46 = vsub.f32 %v609_v42, %v2170_v2 }
  0xf4   :  { %v604_v47 = vpop.permute.xlu0 %603  ;;  %v1129_v49 = vmul.f32 %v1334_v43, %v1890_v3  ;;  %1337 = vpow2.f32 %v1064_v40  ;;  %v822_v50 = vmul.f32 %v1820_v20, %v755_v41 }
  0xf5   :  { %v1336_v48 = vpop.eup %1335  ;;  %v744_v51 = vsub.f32 %v604_v47, %v2170_v2  ;;  %1203 = vst [vmem:[#allocation2 + $0x190] sm:$0xff] %v1139_v44  ;;  %1339 = vpow2.f32 %v1044_v45  ;;  %v1042_v53 = vmul.f32 1.442695, %v936_v34  ;;  %v812_v55 = vmul.f32 %v1820_v20, %v745_v46 }
  0xf6   :  { %v1128_v52 = vmul.f32 %v1336_v48, %v1890_v3  ;;  %1193 = vst [vmem:[#allocation2 + $0x140] sm:$0xff] %v1129_v49  ;;  %v886_v56 = vmul.f32 -0.5, %v822_v50 }
  0xf7   :  { %v811_v57 = vmul.f32 %v1820_v20, %v744_v51  ;;  %1341 = vpow2.f32 %v1042_v53  ;;  %v876_v58 = vmul.f32 -0.5, %v812_v55 }
  0xf8   :  { %1192 = vst [vmem:[#allocation2 + $0x138] sm:$0xff] %v1128_v52  ;;  %v950_v54 = vmul.f32 %v886_v56, %v822_v50 }
  0xf9   :  { %v875_v59 = vmul.f32 -0.5, %v811_v57  ;;  %v940_v60 = vmul.f32 %v876_v58, %v812_v55  ;;  %v674_v61 = vpop.permute.xlu2 %673 }
  0xfa   :  { %v1338_v62 = vpop.eup %1337  ;;  %v1070_v63 = vmul.f32 1.442695, %v950_v54  ;;  %v758_v1 = vsub.f32 %v674_v61, %v2170_v2  ;;  %v624_v14 = vpop.permute.xlu1 %623 }
  0xfb   :  { %v939_v0 = vmul.f32 %v875_v59, %v811_v57  ;;  %v1340_v4 = vpop.eup %1339  ;;  %v1142_v5 = vmul.f32 %v1338_v62, %v1890_v3  ;;  %v1050_v6 = vmul.f32 1.442695, %v940_v60  ;;  %v748_v7 = vsub.f32 %v624_v14, %v2170_v2 }
  0xfc   :  { %v619_v8 = vpop.permute.xlu0 %618  ;;  %v1132_v9 = vmul.f32 %v1340_v4, %v1890_v3  ;;  %1343 = vpow2.f32 %v1070_v63  ;;  %v825_v11 = vmul.f32 %v1820_v20, %v758_v1 }
  0xfd   :  { %v1048_v10 = vmul.f32 1.442695, %v939_v0  ;;  %v1342_v12 = vpop.eup %1341  ;;  %1206 = vst [vmem:[#allocation2 + $0x1a8] sm:$0xff] %v1142_v5  ;;  %1345 = vpow2.f32 %v1050_v6  ;;  %v815_v13 = vmul.f32 %v1820_v20, %v748_v7  ;;  %v747_v15 = vsub.f32 %v619_v8, %v2170_v2 }
  0xfe   :  { %1196 = vst [vmem:[#allocation2 + $0x158] sm:$0xff] %v1132_v9  ;;  %v1131_v16 = vmul.f32 %v1342_v12, %v1890_v3  ;;  %v889_v17 = vmul.f32 -0.5, %v825_v11 }
  0xff   :  { %1347 = vpow2.f32 %v1048_v10  ;;  %v879_v18 = vmul.f32 -0.5, %v815_v13  ;;  %v814_v19 = vmul.f32 %v1820_v20, %v747_v15 }
 0x100   :  { %1195 = vst [vmem:[#allocation2 + $0x150] sm:$0xff] %v1131_v16  ;;  %v953_v21 = vmul.f32 %v889_v17, %v825_v11 }
 0x101   :  { %v943_v22 = vmul.f32 %v879_v18, %v815_v13  ;;  %v878_v23 = vmul.f32 -0.5, %v814_v19  ;;  %v689_v24 = vpop.permute.xlu2 %688 }
 0x102   :  { %v1344_v25 = vpop.eup %1343  ;;  %v1076_v26 = vmul.f32 1.442695, %v953_v21  ;;  %v761_v27 = vsub.f32 %v689_v24, %v2170_v2  ;;  %v639_v28 = vpop.permute.xlu1 %638 }
 0x103   :  { %v1346_v29 = vpop.eup %1345  ;;  %v1145_v30 = vmul.f32 %v1344_v25, %v1890_v3  ;;  %v1056_v31 = vmul.f32 1.442695, %v943_v22  ;;  %v942_v32 = vmul.f32 %v878_v23, %v814_v19  ;;  %v751_v33 = vsub.f32 %v639_v28, %v2170_v2 }
 0x104   :  { %v634_v35 = vpop.permute.xlu0 %633  ;;  %v1135_v37 = vmul.f32 %v1346_v29, %v1890_v3  ;;  %1349 = vpow2.f32 %v1076_v26  ;;  %v828_v38 = vmul.f32 %v1820_v20, %v761_v27 }
 0x105   :  { %v1348_v36 = vpop.eup %1347  ;;  %v750_v39 = vsub.f32 %v634_v35, %v2170_v2  ;;  %1209 = vst [vmem:[#allocation2 + $0x1c0] sm:$0xff] %v1145_v30  ;;  %1351 = vpow2.f32 %v1056_v31  ;;  %v1054_v41 = vmul.f32 1.442695, %v942_v32  ;;  %v818_v42 = vmul.f32 %v1820_v20, %v751_v33 }
 0x106   :  { %v1134_v40 = vmul.f32 %v1348_v36, %v1890_v3  ;;  %1199 = vst [vmem:[#allocation2 + $0x170] sm:$0xff] %v1135_v37  ;;  %v892_v43 = vmul.f32 -0.5, %v828_v38 }
 0x107   :  { %v817_v44 = vmul.f32 %v1820_v20, %v750_v39  ;;  %1353 = vpow2.f32 %v1054_v41  ;;  %v882_v45 = vmul.f32 -0.5, %v818_v42 }
 0x108   :  { %1198 = vst [vmem:[#allocation2 + $0x168] sm:$0xff] %v1134_v40  ;;  %v956_v34 = vmul.f32 %v892_v43, %v828_v38 }
 0x109   :  { %v881_v46 = vmul.f32 -0.5, %v817_v44  ;;  %v946_v47 = vmul.f32 %v882_v45, %v818_v42 }
 0x10a   :  { %v1350_v48 = vpop.eup %1349  ;;  %v1082_v49 = vmul.f32 1.442695, %v956_v34  ;;  %v654_v51 = vpop.permute.xlu1 %653 }
 0x10b   :  { %v945_v50 = vmul.f32 %v881_v46, %v817_v44  ;;  %v1352_v52 = vpop.eup %1351  ;;  %v1148_v53 = vmul.f32 %v1350_v48, %v1890_v3  ;;  %v1062_v55 = vmul.f32 1.442695, %v946_v47  ;;  %v754_v56 = vsub.f32 %v654_v51, %v2170_v2 }
 0x10c   :  { %v649_v57 = vpop.permute.xlu0 %648  ;;  %v1138_v58 = vmul.f32 %v1352_v52, %v1890_v3  ;;  %1355 = vpow2.f32 %v1082_v49 }
 0x10d   :  { %v1060_v54 = vmul.f32 1.442695, %v945_v50  ;;  %v753_v59 = vsub.f32 %v649_v57, %v2170_v2  ;;  %v1354_v60 = vpop.eup %1353  ;;  %1212 = vst [vmem:[#allocation2 + $0x1d8] sm:$0xff] %v1148_v53  ;;  %1357 = vpow2.f32 %v1062_v55  ;;  %v821_v61 = vmul.f32 %v1820_v20, %v754_v56 }
 0x10e   :  { %1202 = vst [vmem:[#allocation2 + $0x188] sm:$0xff] %v1138_v58  ;;  %v1137_v62 = vmul.f32 %v1354_v60, %v1890_v3 }
 0x10f   :  { %1359 = vpow2.f32 %v1060_v54  ;;  %v820_v63 = vmul.f32 %v1820_v20, %v753_v59  ;;  %v885_v0 = vmul.f32 -0.5, %v821_v61 }
 0x110   :  { %1201 = vst [vmem:[#allocation2 + $0x180] sm:$0xff] %v1137_v62 }
 0x111   :  { %v884_v1 = vmul.f32 -0.5, %v820_v63  ;;  %v949_v14 = vmul.f32 %v885_v0, %v821_v61 }
 0x112   :  { %v1356_v4 = vpop.eup %1355  ;;  %v669_v6 = vpop.permute.xlu1 %668 }
 0x113   :  { %v948_v5 = vmul.f32 %v884_v1, %v820_v63  ;;  %v1358_v7 = vpop.eup %1357  ;;  %v1151_v8 = vmul.f32 %v1356_v4, %v1890_v3  ;;  %v1068_v9 = vmul.f32 1.442695, %v949_v14  ;;  %v757_v10 = vsub.f32 %v669_v6, %v2170_v2 }
 0x114   :  { %v664_v11 = vpop.permute.xlu0 %663  ;;  %v1141_v13 = vmul.f32 %v1358_v7, %v1890_v3 }
 0x115   :  { %v1360_v12 = vpop.eup %1359  ;;  %v1066_v15 = vmul.f32 1.442695, %v948_v5  ;;  %v756_v16 = vsub.f32 %v664_v11, %v2170_v2  ;;  %1215 = vst [vmem:[#allocation2 + $0x1f0] sm:$0xff] %v1151_v8  ;;  %1361 = vpow2.f32 %v1068_v9  ;;  %v824_v18 = vmul.f32 %v1820_v20, %v757_v10 }
 0x116   :  { %v1140_v17 = vmul.f32 %v1360_v12, %v1890_v3  ;;  %1205 = vst [vmem:[#allocation2 + $0x1a0] sm:$0xff] %v1141_v13 }
 0x117   :  { %1363 = vpow2.f32 %v1066_v15  ;;  %v823_v19 = vmul.f32 %v1820_v20, %v756_v16  ;;  %v888_v21 = vmul.f32 -0.5, %v824_v18 }
 0x118   :  { %1204 = vst [vmem:[#allocation2 + $0x198] sm:$0xff] %v1140_v17 }
 0x119   :  { %v887_v22 = vmul.f32 -0.5, %v823_v19  ;;  %v952_v23 = vmul.f32 %v888_v21, %v824_v18 }
 0x11a   :  { %v684_v25 = vpop.permute.xlu1 %683 }
 0x11b   :  { %v951_v24 = vmul.f32 %v887_v22, %v823_v19  ;;  %v1362_v26 = vpop.eup %1361  ;;  %v1074_v27 = vmul.f32 1.442695, %v952_v23  ;;  %v760_v28 = vsub.f32 %v684_v25, %v2170_v2 }
 0x11c   :  { %v679_v29 = vpop.permute.xlu0 %678  ;;  %v1144_v31 = vmul.f32 %v1362_v26, %v1890_v3 }
 0x11d   :  { %v1364_v30 = vpop.eup %1363  ;;  %v1072_v32 = vmul.f32 1.442695, %v951_v24  ;;  %v759_v33 = vsub.f32 %v679_v29, %v2170_v2  ;;  %1365 = vpow2.f32 %v1074_v27  ;;  %v827_v36 = vmul.f32 %v1820_v20, %v760_v28 }
 0x11e   :  { %v1143_v35 = vmul.f32 %v1364_v30, %v1890_v3  ;;  %1208 = vst [vmem:[#allocation2 + $0x1b8] sm:$0xff] %v1144_v31 }
 0x11f   :  { %1367 = vpow2.f32 %v1072_v32  ;;  %v826_v37 = vmul.f32 %v1820_v20, %v759_v33  ;;  %v891_v38 = vmul.f32 -0.5, %v827_v36 }
 0x120   :  { %1207 = vst [vmem:[#allocation2 + $0x1b0] sm:$0xff] %v1143_v35 }
 0x121   :  { %v890_v39 = vmul.f32 -0.5, %v826_v37  ;;  %v955_v40 = vmul.f32 %v891_v38, %v827_v36 }
 0x123   :  { %v954_v41 = vmul.f32 %v890_v39, %v826_v37  ;;  %v1366_v42 = vpop.eup %1365  ;;  %v1080_v43 = vmul.f32 1.442695, %v955_v40 }
 0x124   :  { %v694_v44 = vpop.permute.xlu0 %693  ;;  %v1147_v34 = vmul.f32 %v1366_v42, %v1890_v3 }
 0x125   :  { %v1368_v45 = vpop.eup %1367  ;;  %v1078_v46 = vmul.f32 1.442695, %v954_v41  ;;  %v762_v47 = vsub.f32 %v694_v44, %v2170_v2  ;;  %1369 = vpow2.f32 %v1080_v43 }
 0x126   :  { %v1146_v48 = vmul.f32 %v1368_v45, %v1890_v3  ;;  %1211 = vst [vmem:[#allocation2 + $0x1d0] sm:$0xff] %v1147_v34 }
 0x127   :  { %1371 = vpow2.f32 %v1078_v46  ;;  %v829_v49 = vmul.f32 %v1820_v20, %v762_v47 }
 0x128   :  { %1210 = vst [vmem:[#allocation2 + $0x1c8] sm:$0xff] %v1146_v48 }
 0x129   :  { %v893_v50 = vmul.f32 -0.5, %v829_v49 }
 0x12b   :  { %v957_v51 = vmul.f32 %v893_v50, %v829_v49  ;;  %v1370_v52 = vpop.eup %1369 }
 0x12c   :  { %v1150_v55 = vmul.f32 %v1370_v52, %v1890_v3 }
 0x12d   :  { %v1372_v53 = vpop.eup %1371  ;;  %v1084_v56 = vmul.f32 1.442695, %v957_v51 }
 0x12e   :  { %v1149_v57 = vmul.f32 %v1372_v53, %v1890_v3  ;;  %1214 = vst [vmem:[#allocation2 + $0x1e8] sm:$0xff] %v1150_v55 }
 0x12f   :  { %1373 = vpow2.f32 %v1084_v56 }
 0x130   :  { %1213 = vst [vmem:[#allocation2 + $0x1e0] sm:$0xff] %v1149_v57 }
 0x135   :  { %v1374_v20 = vpop.eup %1373 }
 0x136   :  { %v1152_v2 = vmul.f32 %v1374_v20, %v1890_v3 }
 0x138   :  { %1216 = vst [vmem:[#allocation2 + $0x1f8] sm:$0xff] %v1152_v2 }
 0x139   :  { %1229 = dma.vmem_to_hbm [thread:$0]  %s1222_s21, 8192, %s1224_s24, [#allocation3], %s1404_s25, %s1404_s25, %s1405_s26  }
 0x13a   :  { %1400 = dma.done.wait [#allocation3], 8192  }
 0x13b   :  { %1401 = vsyncadd [#allocation3], 4294959104 }
 0x13c   :  { %1234 = vsyncpa [#allocation3], 1 }

</bundles_post_ra>
